<compile_context>
chip_gen: v5e
topology: v5e:2x2
jax: 0.10.0
libtpu: 0.0.40
codegen_flags: <defaults>
</compile_context>

<pallas_src>
import functools

import jax
import jax.numpy as jnp
from jax.experimental import pallas as pl
from jax.experimental.pallas import tpu as pltpu


def _layer_norm(x, gamma, beta, eps):
    mean = jnp.mean(x, axis=-1, keepdims=True)
    var = jnp.mean(jnp.square(x - mean), axis=-1, keepdims=True)
    return (x - mean) * jax.lax.rsqrt(var + eps) * gamma + beta


def _encoder_layer_kernel(
    x_ref, mask_ref,
    wq_ref, bq_ref, wk_ref, bk_ref, wv_ref, bv_ref,
    wo_ref, bo_ref, ln1_g_ref, ln1_b_ref,
    w1_ref, b1_ref, w2_ref, b2_ref,
    ln2_g_ref, ln2_b_ref,
    out_ref, att_ref,
    *, n_heads, d_k, scale, eps,
):
    # x_ref: (L, D), mask_ref: (1, L), out_ref: (L, D), att_ref: (H, L, L)
    x = x_ref[...]
    mask = mask_ref[...]

    # QKV projections (single wide MXU matmul each, K=N=d_model).
    q = jnp.dot(x, wq_ref[...], preferred_element_type=jnp.float32) + bq_ref[...]
    k = jnp.dot(x, wk_ref[...], preferred_element_type=jnp.float32) + bk_ref[...]
    v = jnp.dot(x, wv_ref[...], preferred_element_type=jnp.float32) + bv_ref[...]

    inv_scale = 1.0 / scale
    ctx_parts = []
    for h in range(n_heads):                       # static loop over heads
        sl = slice(h * d_k, (h + 1) * d_k)
        qh = q[:, sl] * inv_scale                  # (L, d_k)
        kh = k[:, sl]                              # (L, d_k)
        vh = v[:, sl]                              # (L, d_k)
        # scores = qh @ kh^T without materializing a transpose.
        s = jax.lax.dot_general(
            qh, kh, (((1,), (1,)), ((), ())),
            preferred_element_type=jnp.float32)    # (L, L)
        s = jnp.where(mask == 0.0, -1e9, s)        # broadcast (1,L) over rows
        m = jnp.max(s, axis=-1, keepdims=True)
        p = jnp.exp(s - m)
        attn = p / jnp.sum(p, axis=-1, keepdims=True)
        att_ref[h, :, :] = attn.astype(att_ref.dtype)
        ctx_parts.append(
            jnp.dot(attn, vh, preferred_element_type=jnp.float32))  # (L, d_k)

    context = jnp.concatenate(ctx_parts, axis=-1)  # (L, D)

    # Output projection + residual + LayerNorm.
    attn_out = jnp.dot(context, wo_ref[...],
                       preferred_element_type=jnp.float32) + bo_ref[...]
    y = _layer_norm(attn_out + x, ln1_g_ref[...], ln1_b_ref[...], eps)

    # Position-wise feed-forward + residual + LayerNorm.
    h1 = jnp.maximum(
        jnp.dot(y, w1_ref[...], preferred_element_type=jnp.float32) + b1_ref[...],
        0.0)
    ffn = jnp.dot(h1, w2_ref[...],
                  preferred_element_type=jnp.float32) + b2_ref[...]
    z = _layer_norm(ffn + y, ln2_g_ref[...], ln2_b_ref[...], eps)
    out_ref[...] = z.astype(out_ref.dtype)


def encoder_layer_forward(x, mask, params, *, n_heads, eps=1e-5):
    """x: (B, L, D) f32; mask: (B, 1, L) f32 (0 == padded). Returns (out, att)."""
    B, L, D = x.shape
    assert D % n_heads == 0
    d_k = D // n_heads
    scale = float(d_k) ** 0.5

    # PyTorch nn.Linear weights are (out_features, in_features): transpose so the
    # kernel computes row-major x @ W^T as x @ w_t. Biases/LN params become (1, D).
    def t(w):
        return jnp.asarray(w).T

    def row(b):
        return jnp.asarray(b).reshape(1, -1)

    inputs = (
        x, mask,
        t(params["wq"]), row(params["bq"]),
        t(params["wk"]), row(params["bk"]),
        t(params["wv"]), row(params["bv"]),
        t(params["wo"]), row(params["bo"]),
        row(params["ln1_g"]), row(params["ln1_b"]),
        t(params["w1"]), row(params["b1"]),
        t(params["w2"]), row(params["b2"]),
        row(params["ln2_g"]), row(params["ln2_b"]),
    )

    def resident_spec(a):
        # Full-array block, constant index_map -> stays resident in VMEM.
        return pl.BlockSpec(a.shape, lambda b: (0,) * a.ndim)

    in_specs = [
        pl.BlockSpec((None, L, D), lambda b: (b, 0, 0)),   # x: one batch per step
        pl.BlockSpec((None, 1, L), lambda b: (b, 0, 0)),   # mask
    ] + [resident_spec(a) for a in inputs[2:]]

    out_specs = (
        pl.BlockSpec((None, L, D), lambda b: (b, 0, 0)),
        pl.BlockSpec((None, n_heads, L, L), lambda b: (b, 0, 0, 0)),
    )
    out_shape = (
        jax.ShapeDtypeStruct((B, L, D), x.dtype),
        jax.ShapeDtypeStruct((B, n_heads, L, L), jnp.float32),
    )

    kernel = functools.partial(
        _encoder_layer_kernel, n_heads=n_heads, d_k=d_k, scale=scale, eps=eps)

    out, att = pl.pallas_call(
        kernel,
        out_shape=out_shape,
        grid_spec=pl.GridSpec(
            grid=(B,),
            in_specs=in_specs,
            out_specs=out_specs,
        ),
        compiler_params=pltpu.CompilerParams(
            dimension_semantics=("parallel",),
        ),
    )(*inputs)
    return out, att


# ----------------------------- pure-JAX reference -----------------------------

def _layer_norm_ref(x, g, b, eps=1e-5):
    mean = jnp.mean(x, axis=-1, keepdims=True)
    var = jnp.mean(jnp.square(x - mean), axis=-1, keepdims=True)
    return (x - mean) / jnp.sqrt(var + eps) * g + b


def encoder_layer_ref(x, mask, p, n_heads, eps=1e-5):
    B, L, D = x.shape
    d_k = D // n_heads
    scale = d_k ** 0.5
    q = x @ p["wq"].T + p["bq"]
    k = x @ p["wk"].T + p["bk"]
    v = x @ p["wv"].T + p["bv"]

    def split(t):
        return t.reshape(B, L, n_heads, d_k).transpose(0, 2, 1, 3)

    Q, K, V = split(q), split(k), split(v)
    att = jnp.einsum("bhqd,bhkd->bhqk", Q / scale, K)
    att = jnp.where(mask[:, :, None, :] == 0.0, -1e9, att)
    att = jax.nn.softmax(att, axis=-1)
    ctx = jnp.einsum("bhqk,bhkd->bhqd", att, V)
    ctx = ctx.transpose(0, 2, 1, 3).reshape(B, L, D)
    out = ctx @ p["wo"].T + p["bo"]
    y = _layer_norm_ref(out + x, p["ln1_g"], p["ln1_b"], eps)
    hid = jax.nn.relu(y @ p["w1"].T + p["b1"])
    f = hid @ p["w2"].T + p["b2"]
    z = _layer_norm_ref(f + y, p["ln2_g"], p["ln2_b"], eps)
    return z, att


if __name__ == "__main__":
    # Lane-dense hyperparameters (see perf review): d_model and hidden multiples of 128.
    B, L = 2, 16
    d_model, n_heads, hidden = 128, 8, 256

    key = jax.random.PRNGKey(0)
    keys = jax.random.split(key, 17)

    def linear_init(kw, kb, out_f, in_f):
        bound = 1.0 / jnp.sqrt(jnp.float32(in_f))
        w = jax.random.uniform(kw, (out_f, in_f), jnp.float32, -bound, bound)
        b = jax.random.uniform(kb, (out_f,), jnp.float32, -bound, bound)
        return w, b

    wq, bq = linear_init(keys[0], keys[1], d_model, d_model)
    wk, bk = linear_init(keys[2], keys[3], d_model, d_model)
    wv, bv = linear_init(keys[4], keys[5], d_model, d_model)
    wo, bo = linear_init(keys[6], keys[7], d_model, d_model)
    w1, b1 = linear_init(keys[8], keys[9], hidden, d_model)
    w2, b2 = linear_init(keys[10], keys[11], d_model, hidden)

    params = dict(
        wq=wq, bq=bq, wk=wk, bk=bk, wv=wv, bv=bv, wo=wo, bo=bo,
        ln1_g=1.0 + 0.1 * jax.random.normal(keys[12], (d_model,), jnp.float32),
        ln1_b=0.1 * jax.random.normal(keys[13], (d_model,), jnp.float32),
        w1=w1, b1=b1, w2=w2, b2=b2,
        ln2_g=1.0 + 0.1 * jax.random.normal(keys[14], (d_model,), jnp.float32),
        ln2_b=0.1 * jax.random.normal(keys[15], (d_model,), jnp.float32),
    )

    x = jax.random.normal(keys[16], (B, L, d_model), dtype=jnp.float32)

    # Padding mask: batch 1 has its last 4 key positions padded out.
    mask = jnp.ones((B, 1, L), dtype=jnp.float32)
    mask = mask.at[1, 0, 12:].set(0.0)

    out, att = encoder_layer_forward(x, mask, params, n_heads=n_heads)
    out = jax.block_until_ready(out)
    att = jax.block_until_ready(att)

    out_ref, att_ref = encoder_layer_ref(x, mask, params, n_heads)

    assert out.shape == (B, L, d_model)
    assert att.shape == (B, n_heads, L, L)
    assert jnp.allclose(out, out_ref, atol=1e-3, rtol=1e-3), \
        float(jnp.max(jnp.abs(out - out_ref)))
    assert jnp.allclose(att, att_ref, atol=1e-3, rtol=1e-3), \
        float(jnp.max(jnp.abs(att - att_ref)))

    print("KERNEL_OK")
</pallas_src>

<mosaic_0001>
module attributes {stable_mosaic.version = 11 : i64} {
  func.func @_encoder_layer_kernel(%arg0: i32, %arg1: memref<1x16x128xf32, #tpu.memory_space<vmem>>, %arg2: memref<1x1x16xf32, #tpu.memory_space<vmem>>, %arg3: memref<128x128xf32, #tpu.memory_space<vmem>>, %arg4: memref<1x128xf32, #tpu.memory_space<vmem>>, %arg5: memref<128x128xf32, #tpu.memory_space<vmem>>, %arg6: memref<1x128xf32, #tpu.memory_space<vmem>>, %arg7: memref<128x128xf32, #tpu.memory_space<vmem>>, %arg8: memref<1x128xf32, #tpu.memory_space<vmem>>, %arg9: memref<128x128xf32, #tpu.memory_space<vmem>>, %arg10: memref<1x128xf32, #tpu.memory_space<vmem>>, %arg11: memref<1x128xf32, #tpu.memory_space<vmem>>, %arg12: memref<1x128xf32, #tpu.memory_space<vmem>>, %arg13: memref<128x256xf32, #tpu.memory_space<vmem>>, %arg14: memref<1x256xf32, #tpu.memory_space<vmem>>, %arg15: memref<256x128xf32, #tpu.memory_space<vmem>>, %arg16: memref<1x128xf32, #tpu.memory_space<vmem>>, %arg17: memref<1x128xf32, #tpu.memory_space<vmem>>, %arg18: memref<1x128xf32, #tpu.memory_space<vmem>>, %arg19: memref<1x16x128xf32, #tpu.memory_space<vmem>>, %arg20: memref<1x8x16x16xf32, #tpu.memory_space<vmem>>) attributes {dimension_semantics = [#tpu.dimension_semantics<parallel>], iteration_bounds = array<i64: 2>, scalar_prefetch = 0 : i64, scratch_operands = 0 : i64, tpu.core_type = #tpu.core_type<tc>, window_params = [{transform_indices = @transform_0, window_bounds = array<i64: 1, 16, 128>}, {transform_indices = @transform_1, window_bounds = array<i64: 1, 1, 16>}, {pipeline_mode = #tpu.pipeline_mode<synchronous>, transform_indices = @transform_2, window_bounds = array<i64: 128, 128>}, {pipeline_mode = #tpu.pipeline_mode<synchronous>, transform_indices = @transform_3, window_bounds = array<i64: 1, 128>}, {pipeline_mode = #tpu.pipeline_mode<synchronous>, transform_indices = @transform_4, window_bounds = array<i64: 128, 128>}, {pipeline_mode = #tpu.pipeline_mode<synchronous>, transform_indices = @transform_5, window_bounds = array<i64: 1, 128>}, {pipeline_mode = #tpu.pipeline_mode<synchronous>, transform_indices = @transform_6, window_bounds = array<i64: 128, 128>}, {pipeline_mode = #tpu.pipeline_mode<synchronous>, transform_indices = @transform_7, window_bounds = array<i64: 1, 128>}, {pipeline_mode = #tpu.pipeline_mode<synchronous>, transform_indices = @transform_8, window_bounds = array<i64: 128, 128>}, {pipeline_mode = #tpu.pipeline_mode<synchronous>, transform_indices = @transform_9, window_bounds = array<i64: 1, 128>}, {pipeline_mode = #tpu.pipeline_mode<synchronous>, transform_indices = @transform_10, window_bounds = array<i64: 1, 128>}, {pipeline_mode = #tpu.pipeline_mode<synchronous>, transform_indices = @transform_11, window_bounds = array<i64: 1, 128>}, {pipeline_mode = #tpu.pipeline_mode<synchronous>, transform_indices = @transform_12, window_bounds = array<i64: 128, 256>}, {pipeline_mode = #tpu.pipeline_mode<synchronous>, transform_indices = @transform_13, window_bounds = array<i64: 1, 256>}, {pipeline_mode = #tpu.pipeline_mode<synchronous>, transform_indices = @transform_14, window_bounds = array<i64: 256, 128>}, {pipeline_mode = #tpu.pipeline_mode<synchronous>, transform_indices = @transform_15, window_bounds = array<i64: 1, 128>}, {pipeline_mode = #tpu.pipeline_mode<synchronous>, transform_indices = @transform_16, window_bounds = array<i64: 1, 128>}, {pipeline_mode = #tpu.pipeline_mode<synchronous>, transform_indices = @transform_17, window_bounds = array<i64: 1, 128>}, {transform_indices = @transform_18, window_bounds = array<i64: 1, 16, 128>}, {transform_indices = @transform_19, window_bounds = array<i64: 1, 8, 16, 16>}]} {
    %c0 = arith.constant 0 : index
    %c0_0 = arith.constant 0 : index
    %c0_1 = arith.constant 0 : index
    %0 = vector.load %arg1[%c0, %c0_0, %c0_1] : memref<1x16x128xf32, #tpu.memory_space<vmem>>, vector<1x16x128xf32>
    %1 = vector.shape_cast %0 : vector<1x16x128xf32> to vector<16x128xf32>
    %c0_2 = arith.constant 0 : index
    %c0_3 = arith.constant 0 : index
    %c0_4 = arith.constant 0 : index
    %2 = vector.load %arg2[%c0_2, %c0_3, %c0_4] : memref<1x1x16xf32, #tpu.memory_space<vmem>>, vector<1x1x16xf32>
    %3 = vector.shape_cast %2 : vector<1x1x16xf32> to vector<1x16xf32>
    %c0_5 = arith.constant 0 : index
    %c0_6 = arith.constant 0 : index
    %4 = vector.load %arg3[%c0_5, %c0_6] : memref<128x128xf32, #tpu.memory_space<vmem>>, vector<128x128xf32>
    %cst = arith.constant dense<0.000000e+00> : vector<16x128xf32>
    %5 = tpu.matmul %1, %4, %cst {dimension_numbers = #tpu.dot_dimension_numbers<[1], [0], [0], [1], [0, 0, 1, 1], [], []>} : vector<16x128xf32>, vector<128x128xf32>, vector<16x128xf32> -> vector<16x128xf32>
    %c0_7 = arith.constant 0 : index
    %c0_8 = arith.constant 0 : index
    %6 = vector.load %arg4[%c0_7, %c0_8] : memref<1x128xf32, #tpu.memory_space<vmem>>, vector<1x128xf32>
    %7 = vector.broadcast %6 : vector<1x128xf32> to vector<16x128xf32>
    %8 = arith.addf %5, %7 : vector<16x128xf32>
    %c0_9 = arith.constant 0 : index
    %c0_10 = arith.constant 0 : index
    %9 = vector.load %arg5[%c0_9, %c0_10] : memref<128x128xf32, #tpu.memory_space<vmem>>, vector<128x128xf32>
    %cst_11 = arith.constant dense<0.000000e+00> : vector<16x128xf32>
    %10 = tpu.matmul %1, %9, %cst_11 {dimension_numbers = #tpu.dot_dimension_numbers<[1], [0], [0], [1], [0, 0, 1, 1], [], []>} : vector<16x128xf32>, vector<128x128xf32>, vector<16x128xf32> -> vector<16x128xf32>
    %c0_12 = arith.constant 0 : index
    %c0_13 = arith.constant 0 : index
    %11 = vector.load %arg6[%c0_12, %c0_13] : memref<1x128xf32, #tpu.memory_space<vmem>>, vector<1x128xf32>
    %12 = vector.broadcast %11 : vector<1x128xf32> to vector<16x128xf32>
    %13 = arith.addf %10, %12 : vector<16x128xf32>
    %c0_14 = arith.constant 0 : index
    %c0_15 = arith.constant 0 : index
    %14 = vector.load %arg7[%c0_14, %c0_15] : memref<128x128xf32, #tpu.memory_space<vmem>>, vector<128x128xf32>
    %cst_16 = arith.constant dense<0.000000e+00> : vector<16x128xf32>
    %15 = tpu.matmul %1, %14, %cst_16 {dimension_numbers = #tpu.dot_dimension_numbers<[1], [0], [0], [1], [0, 0, 1, 1], [], []>} : vector<16x128xf32>, vector<128x128xf32>, vector<16x128xf32> -> vector<16x128xf32>
    %c0_17 = arith.constant 0 : index
    %c0_18 = arith.constant 0 : index
    %16 = vector.load %arg8[%c0_17, %c0_18] : memref<1x128xf32, #tpu.memory_space<vmem>>, vector<1x128xf32>
    %17 = vector.broadcast %16 : vector<1x128xf32> to vector<16x128xf32>
    %18 = arith.addf %15, %17 : vector<16x128xf32>
    %19 = vector.extract_strided_slice %8 {offsets = [0, 0], sizes = [16, 16], strides = [1, 1]} : vector<16x128xf32> to vector<16x16xf32>
    %cst_19 = arith.constant 2.500000e-01 : f32
    %20 = vector.broadcast %cst_19 : f32 to vector<16x16xf32>
    %21 = arith.mulf %19, %20 : vector<16x16xf32>
    %22 = vector.extract_strided_slice %13 {offsets = [0, 0], sizes = [16, 16], strides = [1, 1]} : vector<16x128xf32> to vector<16x16xf32>
    %23 = vector.extract_strided_slice %18 {offsets = [0, 0], sizes = [16, 16], strides = [1, 1]} : vector<16x128xf32> to vector<16x16xf32>
    %cst_20 = arith.constant dense<0.000000e+00> : vector<16x16xf32>
    %24 = tpu.matmul %21, %22, %cst_20 {dimension_numbers = #tpu.dot_dimension_numbers<[1], [1], [0], [0], [0, 0, 1, 0], [], []>} : vector<16x16xf32>, vector<16x16xf32>, vector<16x16xf32> -> vector<16x16xf32>
    %cst_21 = arith.constant 0.000000e+00 : f32
    %25 = vector.broadcast %cst_21 : f32 to vector<1x16xf32>
    %26 = arith.cmpf oeq, %3, %25 : vector<1x16xf32>
    %cst_22 = arith.constant -1.000000e+09 : f32
    %27 = vector.shape_cast %26 : vector<1x16xi1> to vector<1x16xi1>
    %28 = vector.broadcast %27 : vector<1x16xi1> to vector<16x16xi1>
    %29 = vector.broadcast %cst_22 : f32 to vector<16x16xf32>
    %30 = arith.select %28, %29, %24 : vector<16x16xi1>, vector<16x16xf32>
    %cst_23 = arith.constant dense<0xFF800000> : vector<16xf32>
    %31 = vector.multi_reduction <maximumf>, %30, %cst_23 [1] : vector<16x16xf32> to vector<16xf32>
    %32 = vector.shape_cast %31 : vector<16xf32> to vector<16x1xf32>
    %33 = vector.broadcast %32 : vector<16x1xf32> to vector<16x16xf32>
    %34 = arith.subf %30, %33 : vector<16x16xf32>
    %35 = math.exp %34 : vector<16x16xf32>
    %cst_24 = arith.constant dense<0.000000e+00> : vector<16xf32>
    %36 = vector.multi_reduction <add>, %35, %cst_24 [1] : vector<16x16xf32> to vector<16xf32>
    %37 = vector.shape_cast %36 : vector<16xf32> to vector<16x1xf32>
    %38 = vector.broadcast %37 : vector<16x1xf32> to vector<16x16xf32>
    %39 = arith.divf %35, %38 : vector<16x16xf32>
    %c0_25 = arith.constant 0 : index
    %c0_26 = arith.constant 0 : index
    %c0_27 = arith.constant 0 : index
    %c0_28 = arith.constant 0 : index
    %40 = vector.load %arg20[%c0_25, %c0_26, %c0_27, %c0_28] : memref<1x8x16x16xf32, #tpu.memory_space<vmem>>, vector<1x1x16x16xf32>
    %41 = vector.shape_cast %40 : vector<1x1x16x16xf32> to vector<16x16xf32>
    %42 = vector.shape_cast %39 : vector<16x16xf32> to vector<1x1x16x16xf32>
    tpu.vector_store %arg20[%c0_25, %c0_26, %c0_27, %c0_28], %42 {strides = array<i32>} : memref<1x8x16x16xf32, #tpu.memory_space<vmem>>, vector<1x1x16x16xf32>,
    %cst_29 = arith.constant dense<0.000000e+00> : vector<16x16xf32>
    %43 = tpu.matmul %39, %23, %cst_29 {dimension_numbers = #tpu.dot_dimension_numbers<[1], [0], [0], [1], [0, 0, 1, 1], [], []>} : vector<16x16xf32>, vector<16x16xf32>, vector<16x16xf32> -> vector<16x16xf32>
    %44 = vector.extract_strided_slice %8 {offsets = [0, 16], sizes = [16, 16], strides = [1, 1]} : vector<16x128xf32> to vector<16x16xf32>
    %cst_30 = arith.constant 2.500000e-01 : f32
    %45 = vector.broadcast %cst_30 : f32 to vector<16x16xf32>
    %46 = arith.mulf %44, %45 : vector<16x16xf32>
    %47 = vector.extract_strided_slice %13 {offsets = [0, 16], sizes = [16, 16], strides = [1, 1]} : vector<16x128xf32> to vector<16x16xf32>
    %48 = vector.extract_strided_slice %18 {offsets = [0, 16], sizes = [16, 16], strides = [1, 1]} : vector<16x128xf32> to vector<16x16xf32>
    %cst_31 = arith.constant dense<0.000000e+00> : vector<16x16xf32>
    %49 = tpu.matmul %46, %47, %cst_31 {dimension_numbers = #tpu.dot_dimension_numbers<[1], [1], [0], [0], [0, 0, 1, 0], [], []>} : vector<16x16xf32>, vector<16x16xf32>, vector<16x16xf32> -> vector<16x16xf32>
    %cst_32 = arith.constant 0.000000e+00 : f32
    %50 = vector.broadcast %cst_32 : f32 to vector<1x16xf32>
    %51 = arith.cmpf oeq, %3, %50 : vector<1x16xf32>
    %cst_33 = arith.constant -1.000000e+09 : f32
    %52 = vector.shape_cast %51 : vector<1x16xi1> to vector<1x16xi1>
    %53 = vector.broadcast %52 : vector<1x16xi1> to vector<16x16xi1>
    %54 = vector.broadcast %cst_33 : f32 to vector<16x16xf32>
    %55 = arith.select %53, %54, %49 : vector<16x16xi1>, vector<16x16xf32>
    %cst_34 = arith.constant dense<0xFF800000> : vector<16xf32>
    %56 = vector.multi_reduction <maximumf>, %55, %cst_34 [1] : vector<16x16xf32> to vector<16xf32>
    %57 = vector.shape_cast %56 : vector<16xf32> to vector<16x1xf32>
    %58 = vector.broadcast %57 : vector<16x1xf32> to vector<16x16xf32>
    %59 = arith.subf %55, %58 : vector<16x16xf32>
    %60 = math.exp %59 : vector<16x16xf32>
    %cst_35 = arith.constant dense<0.000000e+00> : vector<16xf32>
    %61 = vector.multi_reduction <add>, %60, %cst_35 [1] : vector<16x16xf32> to vector<16xf32>
    %62 = vector.shape_cast %61 : vector<16xf32> to vector<16x1xf32>
    %63 = vector.broadcast %62 : vector<16x1xf32> to vector<16x16xf32>
    %64 = arith.divf %60, %63 : vector<16x16xf32>
    %c0_36 = arith.constant 0 : index
    %c1 = arith.constant 1 : index
    %c0_37 = arith.constant 0 : index
    %c0_38 = arith.constant 0 : index
    %65 = vector.load %arg20[%c0_36, %c1, %c0_37, %c0_38] : memref<1x8x16x16xf32, #tpu.memory_space<vmem>>, vector<1x1x16x16xf32>
    %66 = vector.shape_cast %65 : vector<1x1x16x16xf32> to vector<16x16xf32>
    %67 = vector.shape_cast %64 : vector<16x16xf32> to vector<1x1x16x16xf32>
    tpu.vector_store %arg20[%c0_36, %c1, %c0_37, %c0_38], %67 {strides = array<i32>} : memref<1x8x16x16xf32, #tpu.memory_space<vmem>>, vector<1x1x16x16xf32>,
    %cst_39 = arith.constant dense<0.000000e+00> : vector<16x16xf32>
    %68 = tpu.matmul %64, %48, %cst_39 {dimension_numbers = #tpu.dot_dimension_numbers<[1], [0], [0], [1], [0, 0, 1, 1], [], []>} : vector<16x16xf32>, vector<16x16xf32>, vector<16x16xf32> -> vector<16x16xf32>
    %69 = vector.extract_strided_slice %8 {offsets = [0, 32], sizes = [16, 16], strides = [1, 1]} : vector<16x128xf32> to vector<16x16xf32>
    %cst_40 = arith.constant 2.500000e-01 : f32
    %70 = vector.broadcast %cst_40 : f32 to vector<16x16xf32>
    %71 = arith.mulf %69, %70 : vector<16x16xf32>
    %72 = vector.extract_strided_slice %13 {offsets = [0, 32], sizes = [16, 16], strides = [1, 1]} : vector<16x128xf32> to vector<16x16xf32>
    %73 = vector.extract_strided_slice %18 {offsets = [0, 32], sizes = [16, 16], strides = [1, 1]} : vector<16x128xf32> to vector<16x16xf32>
    %cst_41 = arith.constant dense<0.000000e+00> : vector<16x16xf32>
    %74 = tpu.matmul %71, %72, %cst_41 {dimension_numbers = #tpu.dot_dimension_numbers<[1], [1], [0], [0], [0, 0, 1, 0], [], []>} : vector<16x16xf32>, vector<16x16xf32>, vector<16x16xf32> -> vector<16x16xf32>
    %cst_42 = arith.constant 0.000000e+00 : f32
    %75 = vector.broadcast %cst_42 : f32 to vector<1x16xf32>
    %76 = arith.cmpf oeq, %3, %75 : vector<1x16xf32>
    %cst_43 = arith.constant -1.000000e+09 : f32
    %77 = vector.shape_cast %76 : vector<1x16xi1> to vector<1x16xi1>
    %78 = vector.broadcast %77 : vector<1x16xi1> to vector<16x16xi1>
    %79 = vector.broadcast %cst_43 : f32 to vector<16x16xf32>
    %80 = arith.select %78, %79, %74 : vector<16x16xi1>, vector<16x16xf32>
    %cst_44 = arith.constant dense<0xFF800000> : vector<16xf32>
    %81 = vector.multi_reduction <maximumf>, %80, %cst_44 [1] : vector<16x16xf32> to vector<16xf32>
    %82 = vector.shape_cast %81 : vector<16xf32> to vector<16x1xf32>
    %83 = vector.broadcast %82 : vector<16x1xf32> to vector<16x16xf32>
    %84 = arith.subf %80, %83 : vector<16x16xf32>
    %85 = math.exp %84 : vector<16x16xf32>
    %cst_45 = arith.constant dense<0.000000e+00> : vector<16xf32>
    %86 = vector.multi_reduction <add>, %85, %cst_45 [1] : vector<16x16xf32> to vector<16xf32>
    %87 = vector.shape_cast %86 : vector<16xf32> to vector<16x1xf32>
    %88 = vector.broadcast %87 : vector<16x1xf32> to vector<16x16xf32>
    %89 = arith.divf %85, %88 : vector<16x16xf32>
    %c0_46 = arith.constant 0 : index
    %c2 = arith.constant 2 : index
    %c0_47 = arith.constant 0 : index
    %c0_48 = arith.constant 0 : index
    %90 = vector.load %arg20[%c0_46, %c2, %c0_47, %c0_48] : memref<1x8x16x16xf32, #tpu.memory_space<vmem>>, vector<1x1x16x16xf32>
    %91 = vector.shape_cast %90 : vector<1x1x16x16xf32> to vector<16x16xf32>
    %92 = vector.shape_cast %89 : vector<16x16xf32> to vector<1x1x16x16xf32>
    tpu.vector_store %arg20[%c0_46, %c2, %c0_47, %c0_48], %92 {strides = array<i32>} : memref<1x8x16x16xf32, #tpu.memory_space<vmem>>, vector<1x1x16x16xf32>,
    %cst_49 = arith.constant dense<0.000000e+00> : vector<16x16xf32>
    %93 = tpu.matmul %89, %73, %cst_49 {dimension_numbers = #tpu.dot_dimension_numbers<[1], [0], [0], [1], [0, 0, 1, 1], [], []>} : vector<16x16xf32>, vector<16x16xf32>, vector<16x16xf32> -> vector<16x16xf32>
    %94 = vector.extract_strided_slice %8 {offsets = [0, 48], sizes = [16, 16], strides = [1, 1]} : vector<16x128xf32> to vector<16x16xf32>
    %cst_50 = arith.constant 2.500000e-01 : f32
    %95 = vector.broadcast %cst_50 : f32 to vector<16x16xf32>
    %96 = arith.mulf %94, %95 : vector<16x16xf32>
    %97 = vector.extract_strided_slice %13 {offsets = [0, 48], sizes = [16, 16], strides = [1, 1]} : vector<16x128xf32> to vector<16x16xf32>
    %98 = vector.extract_strided_slice %18 {offsets = [0, 48], sizes = [16, 16], strides = [1, 1]} : vector<16x128xf32> to vector<16x16xf32>
    %cst_51 = arith.constant dense<0.000000e+00> : vector<16x16xf32>
    %99 = tpu.matmul %96, %97, %cst_51 {dimension_numbers = #tpu.dot_dimension_numbers<[1], [1], [0], [0], [0, 0, 1, 0], [], []>} : vector<16x16xf32>, vector<16x16xf32>, vector<16x16xf32> -> vector<16x16xf32>
    %cst_52 = arith.constant 0.000000e+00 : f32
    %100 = vector.broadcast %cst_52 : f32 to vector<1x16xf32>
    %101 = arith.cmpf oeq, %3, %100 : vector<1x16xf32>
    %cst_53 = arith.constant -1.000000e+09 : f32
    %102 = vector.shape_cast %101 : vector<1x16xi1> to vector<1x16xi1>
    %103 = vector.broadcast %102 : vector<1x16xi1> to vector<16x16xi1>
    %104 = vector.broadcast %cst_53 : f32 to vector<16x16xf32>
    %105 = arith.select %103, %104, %99 : vector<16x16xi1>, vector<16x16xf32>
    %cst_54 = arith.constant dense<0xFF800000> : vector<16xf32>
    %106 = vector.multi_reduction <maximumf>, %105, %cst_54 [1] : vector<16x16xf32> to vector<16xf32>
    %107 = vector.shape_cast %106 : vector<16xf32> to vector<16x1xf32>
    %108 = vector.broadcast %107 : vector<16x1xf32> to vector<16x16xf32>
    %109 = arith.subf %105, %108 : vector<16x16xf32>
    %110 = math.exp %109 : vector<16x16xf32>
    %cst_55 = arith.constant dense<0.000000e+00> : vector<16xf32>
    %111 = vector.multi_reduction <add>, %110, %cst_55 [1] : vector<16x16xf32> to vector<16xf32>
    %112 = vector.shape_cast %111 : vector<16xf32> to vector<16x1xf32>
    %113 = vector.broadcast %112 : vector<16x1xf32> to vector<16x16xf32>
    %114 = arith.divf %110, %113 : vector<16x16xf32>
    %c0_56 = arith.constant 0 : index
    %c3 = arith.constant 3 : index
    %c0_57 = arith.constant 0 : index
    %c0_58 = arith.constant 0 : index
    %115 = vector.load %arg20[%c0_56, %c3, %c0_57, %c0_58] : memref<1x8x16x16xf32, #tpu.memory_space<vmem>>, vector<1x1x16x16xf32>
    %116 = vector.shape_cast %115 : vector<1x1x16x16xf32> to vector<16x16xf32>
    %117 = vector.shape_cast %114 : vector<16x16xf32> to vector<1x1x16x16xf32>
    tpu.vector_store %arg20[%c0_56, %c3, %c0_57, %c0_58], %117 {strides = array<i32>} : memref<1x8x16x16xf32, #tpu.memory_space<vmem>>, vector<1x1x16x16xf32>,
    %cst_59 = arith.constant dense<0.000000e+00> : vector<16x16xf32>
    %118 = tpu.matmul %114, %98, %cst_59 {dimension_numbers = #tpu.dot_dimension_numbers<[1], [0], [0], [1], [0, 0, 1, 1], [], []>} : vector<16x16xf32>, vector<16x16xf32>, vector<16x16xf32> -> vector<16x16xf32>
    %119 = vector.extract_strided_slice %8 {offsets = [0, 64], sizes = [16, 16], strides = [1, 1]} : vector<16x128xf32> to vector<16x16xf32>
    %cst_60 = arith.constant 2.500000e-01 : f32
    %120 = vector.broadcast %cst_60 : f32 to vector<16x16xf32>
    %121 = arith.mulf %119, %120 : vector<16x16xf32>
    %122 = vector.extract_strided_slice %13 {offsets = [0, 64], sizes = [16, 16], strides = [1, 1]} : vector<16x128xf32> to vector<16x16xf32>
    %123 = vector.extract_strided_slice %18 {offsets = [0, 64], sizes = [16, 16], strides = [1, 1]} : vector<16x128xf32> to vector<16x16xf32>
    %cst_61 = arith.constant dense<0.000000e+00> : vector<16x16xf32>
    %124 = tpu.matmul %121, %122, %cst_61 {dimension_numbers = #tpu.dot_dimension_numbers<[1], [1], [0], [0], [0, 0, 1, 0], [], []>} : vector<16x16xf32>, vector<16x16xf32>, vector<16x16xf32> -> vector<16x16xf32>
    %cst_62 = arith.constant 0.000000e+00 : f32
    %125 = vector.broadcast %cst_62 : f32 to vector<1x16xf32>
    %126 = arith.cmpf oeq, %3, %125 : vector<1x16xf32>
    %cst_63 = arith.constant -1.000000e+09 : f32
    %127 = vector.shape_cast %126 : vector<1x16xi1> to vector<1x16xi1>
    %128 = vector.broadcast %127 : vector<1x16xi1> to vector<16x16xi1>
    %129 = vector.broadcast %cst_63 : f32 to vector<16x16xf32>
    %130 = arith.select %128, %129, %124 : vector<16x16xi1>, vector<16x16xf32>
    %cst_64 = arith.constant dense<0xFF800000> : vector<16xf32>
    %131 = vector.multi_reduction <maximumf>, %130, %cst_64 [1] : vector<16x16xf32> to vector<16xf32>
    %132 = vector.shape_cast %131 : vector<16xf32> to vector<16x1xf32>
    %133 = vector.broadcast %132 : vector<16x1xf32> to vector<16x16xf32>
    %134 = arith.subf %130, %133 : vector<16x16xf32>
    %135 = math.exp %134 : vector<16x16xf32>
    %cst_65 = arith.constant dense<0.000000e+00> : vector<16xf32>
    %136 = vector.multi_reduction <add>, %135, %cst_65 [1] : vector<16x16xf32> to vector<16xf32>
    %137 = vector.shape_cast %136 : vector<16xf32> to vector<16x1xf32>
    %138 = vector.broadcast %137 : vector<16x1xf32> to vector<16x16xf32>
    %139 = arith.divf %135, %138 : vector<16x16xf32>
    %c0_66 = arith.constant 0 : index
    %c4 = arith.constant 4 : index
    %c0_67 = arith.constant 0 : index
    %c0_68 = arith.constant 0 : index
    %140 = vector.load %arg20[%c0_66, %c4, %c0_67, %c0_68] : memref<1x8x16x16xf32, #tpu.memory_space<vmem>>, vector<1x1x16x16xf32>
    %141 = vector.shape_cast %140 : vector<1x1x16x16xf32> to vector<16x16xf32>
    %142 = vector.shape_cast %139 : vector<16x16xf32> to vector<1x1x16x16xf32>
    tpu.vector_store %arg20[%c0_66, %c4, %c0_67, %c0_68], %142 {strides = array<i32>} : memref<1x8x16x16xf32, #tpu.memory_space<vmem>>, vector<1x1x16x16xf32>,
    %cst_69 = arith.constant dense<0.000000e+00> : vector<16x16xf32>
    %143 = tpu.matmul %139, %123, %cst_69 {dimension_numbers = #tpu.dot_dimension_numbers<[1], [0], [0], [1], [0, 0, 1, 1], [], []>} : vector<16x16xf32>, vector<16x16xf32>, vector<16x16xf32> -> vector<16x16xf32>
    %144 = vector.extract_strided_slice %8 {offsets = [0, 80], sizes = [16, 16], strides = [1, 1]} : vector<16x128xf32> to vector<16x16xf32>
    %cst_70 = arith.constant 2.500000e-01 : f32
    %145 = vector.broadcast %cst_70 : f32 to vector<16x16xf32>
    %146 = arith.mulf %144, %145 : vector<16x16xf32>
    %147 = vector.extract_strided_slice %13 {offsets = [0, 80], sizes = [16, 16], strides = [1, 1]} : vector<16x128xf32> to vector<16x16xf32>
    %148 = vector.extract_strided_slice %18 {offsets = [0, 80], sizes = [16, 16], strides = [1, 1]} : vector<16x128xf32> to vector<16x16xf32>
    %cst_71 = arith.constant dense<0.000000e+00> : vector<16x16xf32>
    %149 = tpu.matmul %146, %147, %cst_71 {dimension_numbers = #tpu.dot_dimension_numbers<[1], [1], [0], [0], [0, 0, 1, 0], [], []>} : vector<16x16xf32>, vector<16x16xf32>, vector<16x16xf32> -> vector<16x16xf32>
    %cst_72 = arith.constant 0.000000e+00 : f32
    %150 = vector.broadcast %cst_72 : f32 to vector<1x16xf32>
    %151 = arith.cmpf oeq, %3, %150 : vector<1x16xf32>
    %cst_73 = arith.constant -1.000000e+09 : f32
    %152 = vector.shape_cast %151 : vector<1x16xi1> to vector<1x16xi1>
    %153 = vector.broadcast %152 : vector<1x16xi1> to vector<16x16xi1>
    %154 = vector.broadcast %cst_73 : f32 to vector<16x16xf32>
    %155 = arith.select %153, %154, %149 : vector<16x16xi1>, vector<16x16xf32>
    %cst_74 = arith.constant dense<0xFF800000> : vector<16xf32>
    %156 = vector.multi_reduction <maximumf>, %155, %cst_74 [1] : vector<16x16xf32> to vector<16xf32>
    %157 = vector.shape_cast %156 : vector<16xf32> to vector<16x1xf32>
    %158 = vector.broadcast %157 : vector<16x1xf32> to vector<16x16xf32>
    %159 = arith.subf %155, %158 : vector<16x16xf32>
    %160 = math.exp %159 : vector<16x16xf32>
    %cst_75 = arith.constant dense<0.000000e+00> : vector<16xf32>
    %161 = vector.multi_reduction <add>, %160, %cst_75 [1] : vector<16x16xf32> to vector<16xf32>
    %162 = vector.shape_cast %161 : vector<16xf32> to vector<16x1xf32>
    %163 = vector.broadcast %162 : vector<16x1xf32> to vector<16x16xf32>
    %164 = arith.divf %160, %163 : vector<16x16xf32>
    %c0_76 = arith.constant 0 : index
    %c5 = arith.constant 5 : index
    %c0_77 = arith.constant 0 : index
    %c0_78 = arith.constant 0 : index
    %165 = vector.load %arg20[%c0_76, %c5, %c0_77, %c0_78] : memref<1x8x16x16xf32, #tpu.memory_space<vmem>>, vector<1x1x16x16xf32>
    %166 = vector.shape_cast %165 : vector<1x1x16x16xf32> to vector<16x16xf32>
    %167 = vector.shape_cast %164 : vector<16x16xf32> to vector<1x1x16x16xf32>
    tpu.vector_store %arg20[%c0_76, %c5, %c0_77, %c0_78], %167 {strides = array<i32>} : memref<1x8x16x16xf32, #tpu.memory_space<vmem>>, vector<1x1x16x16xf32>,
    %cst_79 = arith.constant dense<0.000000e+00> : vector<16x16xf32>
    %168 = tpu.matmul %164, %148, %cst_79 {dimension_numbers = #tpu.dot_dimension_numbers<[1], [0], [0], [1], [0, 0, 1, 1], [], []>} : vector<16x16xf32>, vector<16x16xf32>, vector<16x16xf32> -> vector<16x16xf32>
    %169 = vector.extract_strided_slice %8 {offsets = [0, 96], sizes = [16, 16], strides = [1, 1]} : vector<16x128xf32> to vector<16x16xf32>
    %cst_80 = arith.constant 2.500000e-01 : f32
    %170 = vector.broadcast %cst_80 : f32 to vector<16x16xf32>
    %171 = arith.mulf %169, %170 : vector<16x16xf32>
    %172 = vector.extract_strided_slice %13 {offsets = [0, 96], sizes = [16, 16], strides = [1, 1]} : vector<16x128xf32> to vector<16x16xf32>
    %173 = vector.extract_strided_slice %18 {offsets = [0, 96], sizes = [16, 16], strides = [1, 1]} : vector<16x128xf32> to vector<16x16xf32>
    %cst_81 = arith.constant dense<0.000000e+00> : vector<16x16xf32>
    %174 = tpu.matmul %171, %172, %cst_81 {dimension_numbers = #tpu.dot_dimension_numbers<[1], [1], [0], [0], [0, 0, 1, 0], [], []>} : vector<16x16xf32>, vector<16x16xf32>, vector<16x16xf32> -> vector<16x16xf32>
    %cst_82 = arith.constant 0.000000e+00 : f32
    %175 = vector.broadcast %cst_82 : f32 to vector<1x16xf32>
    %176 = arith.cmpf oeq, %3, %175 : vector<1x16xf32>
    %cst_83 = arith.constant -1.000000e+09 : f32
    %177 = vector.shape_cast %176 : vector<1x16xi1> to vector<1x16xi1>
    %178 = vector.broadcast %177 : vector<1x16xi1> to vector<16x16xi1>
    %179 = vector.broadcast %cst_83 : f32 to vector<16x16xf32>
    %180 = arith.select %178, %179, %174 : vector<16x16xi1>, vector<16x16xf32>
    %cst_84 = arith.constant dense<0xFF800000> : vector<16xf32>
    %181 = vector.multi_reduction <maximumf>, %180, %cst_84 [1] : vector<16x16xf32> to vector<16xf32>
    %182 = vector.shape_cast %181 : vector<16xf32> to vector<16x1xf32>
    %183 = vector.broadcast %182 : vector<16x1xf32> to vector<16x16xf32>
    %184 = arith.subf %180, %183 : vector<16x16xf32>
    %185 = math.exp %184 : vector<16x16xf32>
    %cst_85 = arith.constant dense<0.000000e+00> : vector<16xf32>
    %186 = vector.multi_reduction <add>, %185, %cst_85 [1] : vector<16x16xf32> to vector<16xf32>
    %187 = vector.shape_cast %186 : vector<16xf32> to vector<16x1xf32>
    %188 = vector.broadcast %187 : vector<16x1xf32> to vector<16x16xf32>
    %189 = arith.divf %185, %188 : vector<16x16xf32>
    %c0_86 = arith.constant 0 : index
    %c6 = arith.constant 6 : index
    %c0_87 = arith.constant 0 : index
    %c0_88 = arith.constant 0 : index
    %190 = vector.load %arg20[%c0_86, %c6, %c0_87, %c0_88] : memref<1x8x16x16xf32, #tpu.memory_space<vmem>>, vector<1x1x16x16xf32>
    %191 = vector.shape_cast %190 : vector<1x1x16x16xf32> to vector<16x16xf32>
    %192 = vector.shape_cast %189 : vector<16x16xf32> to vector<1x1x16x16xf32>
    tpu.vector_store %arg20[%c0_86, %c6, %c0_87, %c0_88], %192 {strides = array<i32>} : memref<1x8x16x16xf32, #tpu.memory_space<vmem>>, vector<1x1x16x16xf32>,
    %cst_89 = arith.constant dense<0.000000e+00> : vector<16x16xf32>
    %193 = tpu.matmul %189, %173, %cst_89 {dimension_numbers = #tpu.dot_dimension_numbers<[1], [0], [0], [1], [0, 0, 1, 1], [], []>} : vector<16x16xf32>, vector<16x16xf32>, vector<16x16xf32> -> vector<16x16xf32>
    %194 = vector.extract_strided_slice %8 {offsets = [0, 112], sizes = [16, 16], strides = [1, 1]} : vector<16x128xf32> to vector<16x16xf32>
    %cst_90 = arith.constant 2.500000e-01 : f32
    %195 = vector.broadcast %cst_90 : f32 to vector<16x16xf32>
    %196 = arith.mulf %194, %195 : vector<16x16xf32>
    %197 = vector.extract_strided_slice %13 {offsets = [0, 112], sizes = [16, 16], strides = [1, 1]} : vector<16x128xf32> to vector<16x16xf32>
    %198 = vector.extract_strided_slice %18 {offsets = [0, 112], sizes = [16, 16], strides = [1, 1]} : vector<16x128xf32> to vector<16x16xf32>
    %cst_91 = arith.constant dense<0.000000e+00> : vector<16x16xf32>
    %199 = tpu.matmul %196, %197, %cst_91 {dimension_numbers = #tpu.dot_dimension_numbers<[1], [1], [0], [0], [0, 0, 1, 0], [], []>} : vector<16x16xf32>, vector<16x16xf32>, vector<16x16xf32> -> vector<16x16xf32>
    %cst_92 = arith.constant 0.000000e+00 : f32
    %200 = vector.broadcast %cst_92 : f32 to vector<1x16xf32>
    %201 = arith.cmpf oeq, %3, %200 : vector<1x16xf32>
    %cst_93 = arith.constant -1.000000e+09 : f32
    %202 = vector.shape_cast %201 : vector<1x16xi1> to vector<1x16xi1>
    %203 = vector.broadcast %202 : vector<1x16xi1> to vector<16x16xi1>
    %204 = vector.broadcast %cst_93 : f32 to vector<16x16xf32>
    %205 = arith.select %203, %204, %199 : vector<16x16xi1>, vector<16x16xf32>
    %cst_94 = arith.constant dense<0xFF800000> : vector<16xf32>
    %206 = vector.multi_reduction <maximumf>, %205, %cst_94 [1] : vector<16x16xf32> to vector<16xf32>
    %207 = vector.shape_cast %206 : vector<16xf32> to vector<16x1xf32>
    %208 = vector.broadcast %207 : vector<16x1xf32> to vector<16x16xf32>
    %209 = arith.subf %205, %208 : vector<16x16xf32>
    %210 = math.exp %209 : vector<16x16xf32>
    %cst_95 = arith.constant dense<0.000000e+00> : vector<16xf32>
    %211 = vector.multi_reduction <add>, %210, %cst_95 [1] : vector<16x16xf32> to vector<16xf32>
    %212 = vector.shape_cast %211 : vector<16xf32> to vector<16x1xf32>
    %213 = vector.broadcast %212 : vector<16x1xf32> to vector<16x16xf32>
    %214 = arith.divf %210, %213 : vector<16x16xf32>
    %c0_96 = arith.constant 0 : index
    %c7 = arith.constant 7 : index
    %c0_97 = arith.constant 0 : index
    %c0_98 = arith.constant 0 : index
    %215 = vector.load %arg20[%c0_96, %c7, %c0_97, %c0_98] : memref<1x8x16x16xf32, #tpu.memory_space<vmem>>, vector<1x1x16x16xf32>
    %216 = vector.shape_cast %215 : vector<1x1x16x16xf32> to vector<16x16xf32>
    %217 = vector.shape_cast %214 : vector<16x16xf32> to vector<1x1x16x16xf32>
    tpu.vector_store %arg20[%c0_96, %c7, %c0_97, %c0_98], %217 {strides = array<i32>} : memref<1x8x16x16xf32, #tpu.memory_space<vmem>>, vector<1x1x16x16xf32>,
    %cst_99 = arith.constant dense<0.000000e+00> : vector<16x16xf32>
    %218 = tpu.matmul %214, %198, %cst_99 {dimension_numbers = #tpu.dot_dimension_numbers<[1], [0], [0], [1], [0, 0, 1, 1], [], []>} : vector<16x16xf32>, vector<16x16xf32>, vector<16x16xf32> -> vector<16x16xf32>
    %219 = tpu.concatenate %43, %68, %93, %118, %143, %168, %193, %218 in 1 : vector<16x16xf32>, vector<16x16xf32>, vector<16x16xf32>, vector<16x16xf32>, vector<16x16xf32>, vector<16x16xf32>, vector<16x16xf32>, vector<16x16xf32> -> vector<16x128xf32>
    %c0_100 = arith.constant 0 : index
    %c0_101 = arith.constant 0 : index
    %220 = vector.load %arg9[%c0_100, %c0_101] : memref<128x128xf32, #tpu.memory_space<vmem>>, vector<128x128xf32>
    %cst_102 = arith.constant dense<0.000000e+00> : vector<16x128xf32>
    %221 = tpu.matmul %219, %220, %cst_102 {dimension_numbers = #tpu.dot_dimension_numbers<[1], [0], [0], [1], [0, 0, 1, 1], [], []>} : vector<16x128xf32>, vector<128x128xf32>, vector<16x128xf32> -> vector<16x128xf32>
    %c0_103 = arith.constant 0 : index
    %c0_104 = arith.constant 0 : index
    %222 = vector.load %arg10[%c0_103, %c0_104] : memref<1x128xf32, #tpu.memory_space<vmem>>, vector<1x128xf32>
    %223 = vector.broadcast %222 : vector<1x128xf32> to vector<16x128xf32>
    %224 = arith.addf %221, %223 : vector<16x128xf32>
    %225 = arith.addf %224, %1 : vector<16x128xf32>
    %c0_105 = arith.constant 0 : index
    %c0_106 = arith.constant 0 : index
    %226 = vector.load %arg11[%c0_105, %c0_106] : memref<1x128xf32, #tpu.memory_space<vmem>>, vector<1x128xf32>
    %c0_107 = arith.constant 0 : index
    %c0_108 = arith.constant 0 : index
    %227 = vector.load %arg12[%c0_107, %c0_108] : memref<1x128xf32, #tpu.memory_space<vmem>>, vector<1x128xf32>
    %cst_109 = arith.constant dense<0.000000e+00> : vector<16xf32>
    %228 = vector.multi_reduction <add>, %225, %cst_109 [1] : vector<16x128xf32> to vector<16xf32>
    %229 = vector.shape_cast %228 : vector<16xf32> to vector<16x1xf32>
    %cst_110 = arith.constant 1.280000e+02 : f32
    %230 = vector.broadcast %cst_110 : f32 to vector<16x1xf32>
    %231 = arith.divf %229, %230 : vector<16x1xf32>
    %232 = vector.broadcast %231 : vector<16x1xf32> to vector<16x128xf32>
    %233 = arith.subf %225, %232 : vector<16x128xf32>
    %234 = arith.mulf %233, %233 : vector<16x128xf32>
    %cst_111 = arith.constant dense<0.000000e+00> : vector<16xf32>
    %235 = vector.multi_reduction <add>, %234, %cst_111 [1] : vector<16x128xf32> to vector<16xf32>
    %236 = vector.shape_cast %235 : vector<16xf32> to vector<16x1xf32>
    %cst_112 = arith.constant 1.280000e+02 : f32
    %237 = vector.broadcast %cst_112 : f32 to vector<16x1xf32>
    %238 = arith.divf %236, %237 : vector<16x1xf32>
    %239 = vector.broadcast %231 : vector<16x1xf32> to vector<16x128xf32>
    %240 = arith.subf %225, %239 : vector<16x128xf32>
    %cst_113 = arith.constant 9.99999974E-6 : f32
    %241 = vector.broadcast %cst_113 : f32 to vector<16x1xf32>
    %242 = arith.addf %238, %241 : vector<16x1xf32>
    %243 = math.rsqrt %242 : vector<16x1xf32>
    %244 = vector.broadcast %243 : vector<16x1xf32> to vector<16x128xf32>
    %245 = arith.mulf %240, %244 : vector<16x128xf32>
    %246 = vector.broadcast %226 : vector<1x128xf32> to vector<16x128xf32>
    %247 = arith.mulf %245, %246 : vector<16x128xf32>
    %248 = vector.broadcast %227 : vector<1x128xf32> to vector<16x128xf32>
    %249 = arith.addf %247, %248 : vector<16x128xf32>
    %c0_114 = arith.constant 0 : index
    %c0_115 = arith.constant 0 : index
    %250 = vector.load %arg13[%c0_114, %c0_115] : memref<128x256xf32, #tpu.memory_space<vmem>>, vector<128x256xf32>
    %cst_116 = arith.constant dense<0.000000e+00> : vector<16x256xf32>
    %251 = tpu.matmul %249, %250, %cst_116 {dimension_numbers = #tpu.dot_dimension_numbers<[1], [0], [0], [1], [0, 0, 1, 1], [], []>} : vector<16x128xf32>, vector<128x256xf32>, vector<16x256xf32> -> vector<16x256xf32>
    %c0_117 = arith.constant 0 : index
    %c0_118 = arith.constant 0 : index
    %252 = vector.load %arg14[%c0_117, %c0_118] : memref<1x256xf32, #tpu.memory_space<vmem>>, vector<1x256xf32>
    %253 = vector.broadcast %252 : vector<1x256xf32> to vector<16x256xf32>
    %254 = arith.addf %251, %253 : vector<16x256xf32>
    %cst_119 = arith.constant 0.000000e+00 : f32
    %255 = vector.broadcast %cst_119 : f32 to vector<16x256xf32>
    %256 = arith.maximumf %254, %255 : vector<16x256xf32>
    %c0_120 = arith.constant 0 : index
    %c0_121 = arith.constant 0 : index
    %257 = vector.load %arg15[%c0_120, %c0_121] : memref<256x128xf32, #tpu.memory_space<vmem>>, vector<256x128xf32>
    %cst_122 = arith.constant dense<0.000000e+00> : vector<16x128xf32>
    %258 = tpu.matmul %256, %257, %cst_122 {dimension_numbers = #tpu.dot_dimension_numbers<[1], [0], [0], [1], [0, 0, 1, 1], [], []>} : vector<16x256xf32>, vector<256x128xf32>, vector<16x128xf32> -> vector<16x128xf32>
    %c0_123 = arith.constant 0 : index
    %c0_124 = arith.constant 0 : index
    %259 = vector.load %arg16[%c0_123, %c0_124] : memref<1x128xf32, #tpu.memory_space<vmem>>, vector<1x128xf32>
    %260 = vector.broadcast %259 : vector<1x128xf32> to vector<16x128xf32>
    %261 = arith.addf %258, %260 : vector<16x128xf32>
    %262 = arith.addf %261, %249 : vector<16x128xf32>
    %c0_125 = arith.constant 0 : index
    %c0_126 = arith.constant 0 : index
    %263 = vector.load %arg17[%c0_125, %c0_126] : memref<1x128xf32, #tpu.memory_space<vmem>>, vector<1x128xf32>
    %c0_127 = arith.constant 0 : index
    %c0_128 = arith.constant 0 : index
    %264 = vector.load %arg18[%c0_127, %c0_128] : memref<1x128xf32, #tpu.memory_space<vmem>>, vector<1x128xf32>
    %cst_129 = arith.constant dense<0.000000e+00> : vector<16xf32>
    %265 = vector.multi_reduction <add>, %262, %cst_129 [1] : vector<16x128xf32> to vector<16xf32>
    %266 = vector.shape_cast %265 : vector<16xf32> to vector<16x1xf32>
    %cst_130 = arith.constant 1.280000e+02 : f32
    %267 = vector.broadcast %cst_130 : f32 to vector<16x1xf32>
    %268 = arith.divf %266, %267 : vector<16x1xf32>
    %269 = vector.broadcast %268 : vector<16x1xf32> to vector<16x128xf32>
    %270 = arith.subf %262, %269 : vector<16x128xf32>
    %271 = arith.mulf %270, %270 : vector<16x128xf32>
    %cst_131 = arith.constant dense<0.000000e+00> : vector<16xf32>
    %272 = vector.multi_reduction <add>, %271, %cst_131 [1] : vector<16x128xf32> to vector<16xf32>
    %273 = vector.shape_cast %272 : vector<16xf32> to vector<16x1xf32>
    %cst_132 = arith.constant 1.280000e+02 : f32
    %274 = vector.broadcast %cst_132 : f32 to vector<16x1xf32>
    %275 = arith.divf %273, %274 : vector<16x1xf32>
    %276 = vector.broadcast %268 : vector<16x1xf32> to vector<16x128xf32>
    %277 = arith.subf %262, %276 : vector<16x128xf32>
    %cst_133 = arith.constant 9.99999974E-6 : f32
    %278 = vector.broadcast %cst_133 : f32 to vector<16x1xf32>
    %279 = arith.addf %275, %278 : vector<16x1xf32>
    %280 = math.rsqrt %279 : vector<16x1xf32>
    %281 = vector.broadcast %280 : vector<16x1xf32> to vector<16x128xf32>
    %282 = arith.mulf %277, %281 : vector<16x128xf32>
    %283 = vector.broadcast %263 : vector<1x128xf32> to vector<16x128xf32>
    %284 = arith.mulf %282, %283 : vector<16x128xf32>
    %285 = vector.broadcast %264 : vector<1x128xf32> to vector<16x128xf32>
    %286 = arith.addf %284, %285 : vector<16x128xf32>
    %c0_134 = arith.constant 0 : index
    %c0_135 = arith.constant 0 : index
    %c0_136 = arith.constant 0 : index
    %287 = vector.load %arg19[%c0_134, %c0_135, %c0_136] : memref<1x16x128xf32, #tpu.memory_space<vmem>>, vector<1x16x128xf32>
    %288 = vector.shape_cast %287 : vector<1x16x128xf32> to vector<16x128xf32>
    %289 = vector.shape_cast %286 : vector<16x128xf32> to vector<1x16x128xf32>
    tpu.vector_store %arg19[%c0_134, %c0_135, %c0_136], %289 {strides = array<i32>} : memref<1x16x128xf32, #tpu.memory_space<vmem>>, vector<1x16x128xf32>,
    return
  }
  func.func @transform_0(%arg0: i32) -> (i32, i32, i32) {
    %c0_i32 = arith.constant 0 : i32
    %c0_i32_0 = arith.constant 0 : i32
    %c0_i32_1 = arith.constant 0 : i32
    return %arg0, %c0_i32, %c0_i32_0 : i32, i32, i32
  }
  func.func @transform_1(%arg0: i32) -> (i32, i32, i32) {
    %c0_i32 = arith.constant 0 : i32
    %c0_i32_0 = arith.constant 0 : i32
    %c0_i32_1 = arith.constant 0 : i32
    return %arg0, %c0_i32, %c0_i32_0 : i32, i32, i32
  }
  func.func @transform_2(%arg0: i32) -> (i32, i32) {
    %c0_i32 = arith.constant 0 : i32
    %c0_i32_0 = arith.constant 0 : i32
    %c0_i32_1 = arith.constant 0 : i32
    return %c0_i32, %c0_i32_0 : i32, i32
  }
  func.func @transform_3(%arg0: i32) -> (i32, i32) {
    %c0_i32 = arith.constant 0 : i32
    %c0_i32_0 = arith.constant 0 : i32
    %c0_i32_1 = arith.constant 0 : i32
    return %c0_i32, %c0_i32_0 : i32, i32
  }
  func.func @transform_4(%arg0: i32) -> (i32, i32) {
    %c0_i32 = arith.constant 0 : i32
    %c0_i32_0 = arith.constant 0 : i32
    %c0_i32_1 = arith.constant 0 : i32
    return %c0_i32, %c0_i32_0 : i32, i32
  }
  func.func @transform_5(%arg0: i32) -> (i32, i32) {
    %c0_i32 = arith.constant 0 : i32
    %c0_i32_0 = arith.constant 0 : i32
    %c0_i32_1 = arith.constant 0 : i32
    return %c0_i32, %c0_i32_0 : i32, i32
  }
  func.func @transform_6(%arg0: i32) -> (i32, i32) {
    %c0_i32 = arith.constant 0 : i32
    %c0_i32_0 = arith.constant 0 : i32
    %c0_i32_1 = arith.constant 0 : i32
    return %c0_i32, %c0_i32_0 : i32, i32
  }
  func.func @transform_7(%arg0: i32) -> (i32, i32) {
    %c0_i32 = arith.constant 0 : i32
    %c0_i32_0 = arith.constant 0 : i32
    %c0_i32_1 = arith.constant 0 : i32
    return %c0_i32, %c0_i32_0 : i32, i32
  }
  func.func @transform_8(%arg0: i32) -> (i32, i32) {
    %c0_i32 = arith.constant 0 : i32
    %c0_i32_0 = arith.constant 0 : i32
    %c0_i32_1 = arith.constant 0 : i32
    return %c0_i32, %c0_i32_0 : i32, i32
  }
  func.func @transform_9(%arg0: i32) -> (i32, i32) {
    %c0_i32 = arith.constant 0 : i32
    %c0_i32_0 = arith.constant 0 : i32
    %c0_i32_1 = arith.constant 0 : i32
    return %c0_i32, %c0_i32_0 : i32, i32
  }
  func.func @transform_10(%arg0: i32) -> (i32, i32) {
    %c0_i32 = arith.constant 0 : i32
    %c0_i32_0 = arith.constant 0 : i32
    %c0_i32_1 = arith.constant 0 : i32
    return %c0_i32, %c0_i32_0 : i32, i32
  }
  func.func @transform_11(%arg0: i32) -> (i32, i32) {
    %c0_i32 = arith.constant 0 : i32
    %c0_i32_0 = arith.constant 0 : i32
    %c0_i32_1 = arith.constant 0 : i32
    return %c0_i32, %c0_i32_0 : i32, i32
  }
  func.func @transform_12(%arg0: i32) -> (i32, i32) {
    %c0_i32 = arith.constant 0 : i32
    %c0_i32_0 = arith.constant 0 : i32
    %c0_i32_1 = arith.constant 0 : i32
    return %c0_i32, %c0_i32_0 : i32, i32
  }
  func.func @transform_13(%arg0: i32) -> (i32, i32) {
    %c0_i32 = arith.constant 0 : i32
    %c0_i32_0 = arith.constant 0 : i32
    %c0_i32_1 = arith.constant 0 : i32
    return %c0_i32, %c0_i32_0 : i32, i32
  }
  func.func @transform_14(%arg0: i32) -> (i32, i32) {
    %c0_i32 = arith.constant 0 : i32
    %c0_i32_0 = arith.constant 0 : i32
    %c0_i32_1 = arith.constant 0 : i32
    return %c0_i32, %c0_i32_0 : i32, i32
  }
  func.func @transform_15(%arg0: i32) -> (i32, i32) {
    %c0_i32 = arith.constant 0 : i32
    %c0_i32_0 = arith.constant 0 : i32
    %c0_i32_1 = arith.constant 0 : i32
    return %c0_i32, %c0_i32_0 : i32, i32
  }
  func.func @transform_16(%arg0: i32) -> (i32, i32) {
    %c0_i32 = arith.constant 0 : i32
    %c0_i32_0 = arith.constant 0 : i32
    %c0_i32_1 = arith.constant 0 : i32
    return %c0_i32, %c0_i32_0 : i32, i32
  }
  func.func @transform_17(%arg0: i32) -> (i32, i32) {
    %c0_i32 = arith.constant 0 : i32
    %c0_i32_0 = arith.constant 0 : i32
    %c0_i32_1 = arith.constant 0 : i32
    return %c0_i32, %c0_i32_0 : i32, i32
  }
  func.func @transform_18(%arg0: i32) -> (i32, i32, i32) {
    %c0_i32 = arith.constant 0 : i32
    %c0_i32_0 = arith.constant 0 : i32
    %c0_i32_1 = arith.constant 0 : i32
    return %arg0, %c0_i32, %c0_i32_0 : i32, i32, i32
  }
  func.func @transform_19(%arg0: i32) -> (i32, i32, i32, i32) {
    %c0_i32 = arith.constant 0 : i32
    %c0_i32_0 = arith.constant 0 : i32
    %c0_i32_1 = arith.constant 0 : i32
    %c0_i32_2 = arith.constant 0 : i32
    return %arg0, %c0_i32, %c0_i32_0, %c0_i32_1 : i32, i32, i32, i32
  }
}

</mosaic_0001>

<bundles_post_ra>
// kernel: tpu_custom_call.1
= control target key start
LH: loop header
LB: loop body
LE: loop exit
PB: predicated region body
PF: predicated region fallthrough
CT: control target
= control target key end

     0   :  { %s4195_s0 = inlined_call_operand.hbm [shape: f32[2,16,128], index: 0, kind: input, shape index: {}]   ;;  %s4196_s1 = inlined_call_operand.hbm [shape: f32[2,1,16], index: 1, kind: input, shape index: {}]   ;;  %s4197_s2 = inlined_call_operand.hbm [shape: f32[128,128], index: 2, kind: input, shape index: {}]   ;;  %s4198_s3 = inlined_call_operand.vmem [shape: f32[1,128], index: 3, kind: input, shape index: {}]   ;;  %s4199_s4 = inlined_call_operand.hbm [shape: f32[128,128], index: 4, kind: input, shape index: {}]   ;;  %s4200_s5 = inlined_call_operand.vmem [shape: f32[1,128], index: 5, kind: input, shape index: {}]   ;;  %s4201_s6 = inlined_call_operand.hbm [shape: f32[128,128], index: 6, kind: input, shape index: {}]   ;;  %s4202_s7 = inlined_call_operand.vmem [shape: f32[1,128], index: 7, kind: input, shape index: {}]   ;;  %s4203_s8 = inlined_call_operand.hbm [shape: f32[128,128], index: 8, kind: input, shape index: {}]   ;;  %s4204_s9 = inlined_call_operand.vmem [shape: f32[1,128], index: 9, kind: input, shape index: {}]   ;;  %s4205_s10 = inlined_call_operand.vmem [shape: f32[1,128], index: 10, kind: input, shape index: {}]   ;;  %s4206_s11 = inlined_call_operand.vmem [shape: f32[1,128], index: 11, kind: input, shape index: {}]   ;;  %s4207_s12 = inlined_call_operand.hbm [shape: f32[128,256], index: 12, kind: input, shape index: {}]   ;;  %s4208_s13 = inlined_call_operand.vmem [shape: f32[1,256], index: 13, kind: input, shape index: {}]   ;;  %s4209_s14 = inlined_call_operand.hbm [shape: f32[256,128], index: 14, kind: input, shape index: {}]   ;;  %s4210_s15 = inlined_call_operand.vmem [shape: f32[1,128], index: 15, kind: input, shape index: {}]   ;;  %s4211_s16 = inlined_call_operand.vmem [shape: f32[1,128], index: 16, kind: input, shape index: {}]   ;;  %s4212_s17 = inlined_call_operand.vmem [shape: f32[1,128], index: 17, kind: input, shape index: {}]   ;;  %s4213_s18 = inlined_call_operand.hbm [shape: f32[2,16,128], index: 18, kind: output, shape index: {0}]   ;;  %s4214_s19 = inlined_call_operand.hbm [shape: f32[2,8,16,16], index: 19, kind: output, shape index: {1}]  }
   0x1   :  { %4229 = sst [smem:[#allocation33_spill]] %s4195_s0 }
   0x2   :  { %4230 = sst [smem:[#allocation34_spill]] %s4196_s1 }
   0x3   :  { %4231 = sst [smem:[#allocation35_spill]] %s4197_s2 }
   0x4   :  { %4232 = sst [smem:[#allocation36_spill]] %s4198_s3 }
   0x5   :  { %4233 = sst [smem:[#allocation37_spill]] %s4199_s4 }
   0x6   :  { %4234 = sst [smem:[#allocation38_spill]] %s4201_s6 }
   0x7   :  { %4235 = sst [smem:[#allocation39_spill]] %s4203_s8 }
   0x8   :  { %4236 = sst [smem:[#allocation40_spill]] %s4207_s12 }
   0x9   :  { %4237 = sst [smem:[#allocation41_spill]] %s4209_s14 }
   0xa   :  { %4238 = sst [smem:[#allocation42_spill]] %s4211_s16 }
   0xb   :  { %4239 = sst [smem:[#allocation43_spill]] %s4212_s17 }
   0xc   :  { %4240 = sst [smem:[#allocation44_spill]] %s4213_s18 }
   0xd   :  { %4241 = sst [smem:[#allocation45_spill]] %s4214_s19 }
   0xe   :  { %25 = vsyncpa [#allocation3], 0 }
   0xf   :  { %27 = vsyncpa [#allocation3 + $0x1], 0 }
  0x10   :  { %28 = vsyncpa [#allocation6], 0 }
  0x11   :  { %30 = vsyncpa [#allocation6 + $0x1], 0 }
  0x12   :  { %31 = vsyncpa [#allocation9], 0 }
  0x13   :  { %32 = vsyncpa [#allocation12], 0 }
  0x14   :  { %33 = vsyncpa [#allocation15], 0 }
  0x15   :  { %34 = vsyncpa [#allocation4], 0 }
  0x16   :  { %36 = vsyncpa [#allocation4 + $0x1], 0 }
  0x17   :  { %37 = vsyncpa [#allocation18], 0 }
  0x18   :  { %39 = vsyncpa [#allocation18 + $0x1], 0  ;;  %s3388_s0 = smov 0   ;;  %s3390_s30 = smov 0  }
  0x19   :  { %s3392_s20 = smov 0   ;;  %s3394_s21 = smov 0  }
  0x1a LB: > { %4242 = sst [smem:[#allocation27_spill]] %s3253_s0  ;;  %s3412_s24 = sadd.s32 4294967295, %s3265_s21   ;;  %s3265_s21 = sphi %s3394_s21, %s4284_s21   ;;  %s3261_s20 = sphi %s3392_s20, %s4286_s20   ;;  %s3257_s30 = sphi %s3390_s30, %s4288_s30   ;;  %s3253_s0 = sphi %s3388_s0, %s4287_s0  }
  0x1b   : > { %4243 = sst [smem:[#allocation28_spill]] %s3261_s20  ;;  %p2541_p0 = scmp.ge.s32.totalorder %s3265_s21, 1 }
  0x1c   : > { %s4244_s2 = sld [smem:[#allocation35_spill]]  ;;  %p66_p1 = scmp.eq.s32.totalorder %s3412_s24, 0 }
  0x1d   : > { %p490_p2 = scmp.lt.s32.totalorder %s3265_s21, 3  ;;  %s3267_s3 = smov [#allocation7]  }
  0x1e   : > { %s503_s26 = sshll.u32 %s3267_s3, 4  ;;  %s4246_s4 = sld [smem:[#allocation37_spill]]  ;;  %s504_s26 = int_to_ptr.vmem [resolvable:$true] %s503_s26 }
  0x1f   : > { %p3417_p3 = pnand %p2541_p0, %p490_p2  ;;  %s4248_s8 = sld [smem:[#allocation39_spill]] }
  0x20   : > { %s3268_s18 = smov [#allocation8]   ;;  %s4219_s16 = smov 128  }
  0x21   : > { %p2667_p4 = pneg %p3417_p3  ;;  %s520_s17 = sshll.u32 %s3268_s18, 4  ;;  %s521_s17 = int_to_ptr.vmem [resolvable:$true] %s520_s17 }
  0x22   : > { %s501_s23 = sshll.u32 %s4244_s2, 4  ;;  %s4220_s19 = smov 8   ;;  %s502_s23 = int_to_ptr.hbm [resolvable:$true] %s501_s23 }
  0x23   : > { %p3429_p6 = pnand %p2667_p4, %p66_p1  ;;  %s4249_s6 = sld [smem:[#allocation38_spill]] }
  0x24   : > { %s518_s29 = sshll.u32 %s4246_s4, 4  ;;  %s3271_s18 = smov [#allocation11]   ;;  %s519_s29 = int_to_ptr.hbm [resolvable:$true] %s518_s29 }
  0x25   : > { %s552_s3 = sshll.u32 %s4248_s8, 4  ;;  %s554_s2 = sshll.u32 %s3271_s18, 4  ;;  %s553_s3 = int_to_ptr.hbm [resolvable:$true] %s552_s3  ;;  %s555_s2 = int_to_ptr.vmem [resolvable:$true] %s554_s2 }
  0x26   : > { %2670 = dma.hbm_to_vmem [thread:$0]  (!%p3429_p6), %s502_s23, 2048, %s504_s26, [#allocation6], %s4219_s16, %s4219_s16, %s4220_s19  }
  0x27   : > { %2673 = dma.hbm_to_vmem [thread:$0]  (!%p3429_p6), %s519_s29, 2048, %s521_s17, [#allocation9], %s4219_s16, %s4219_s16, %s4220_s19  }
  0x28   : > { %2679 = dma.hbm_to_vmem [thread:$0]  (!%p3429_p6), %s553_s3, 2048, %s555_s2, [#allocation12], %s4219_s16, %s4219_s16, %s4220_s19  }
  0x29   : > { %s535_s22 = sshll.u32 %s4249_s6, 4  ;;  %s3272_s23 = smov [#allocation10]   ;;  %s536_s22 = int_to_ptr.hbm [resolvable:$true] %s535_s22 }
  0x2a   : > { %s537_s26 = sshll.u32 %s3272_s23, 4  ;;  %s4250_s12 = sld [smem:[#allocation40_spill]]  ;;  %s538_s26 = int_to_ptr.vmem [resolvable:$true] %s537_s26 }
  0x2b   : > { %2676 = dma.hbm_to_vmem [thread:$0]  (!%p3429_p6), %s536_s22, 2048, %s538_s26, [#allocation9], %s4219_s16, %s4219_s16, %s4220_s19  }
  0x2c   : > { %s3273_s29 = smov [#allocation13]   ;;  %s4251_s14 = sld [smem:[#allocation41_spill]] }
  0x2d   : > { %s577_s3 = sshll.u32 %s3273_s29, 4  ;;  %s3274_s28 = smov 256   ;;  %s578_s3 = int_to_ptr.vmem [resolvable:$true] %s577_s3 }
  0x2e   : > { %s3275_s18 = smov 16   ;;  %s3276_s22 = smov [#allocation14]  }
  0x2f   : > { %s594_s2 = sshll.u32 %s3276_s22, 4  ;;  %s2540_s23 = sadd.s32 4294967294, %s3265_s21   ;;  %s595_s2 = int_to_ptr.vmem [resolvable:$true] %s594_s2 }
  0x30   : > { %s575_s17 = sshll.u32 %s4250_s12, 4  ;;  %s3474_s26 = sadd.s32 1, %s3265_s21   ;;  %s576_s17 = int_to_ptr.hbm [resolvable:$true] %s575_s17 }
  0x31   : > { %2682 = dma.hbm_to_vmem [thread:$0]  (!%p3429_p6), %s576_s17, 4096, %s578_s3, [#allocation12], %s3274_s28, %s3274_s28, %s3275_s18  }
  0x32   : > { %s592_s8 = sshll.u32 %s4251_s14, 4  ;;  %4252 = sst [smem:[#allocation29_spill]] %s3474_s26  ;;  %s593_s8 = int_to_ptr.hbm [resolvable:$true] %s592_s8 }
  0x33   : > { %2685 = dma.hbm_to_vmem [thread:$0]  (!%p3429_p6), %s593_s8, 4096, %s595_s2, [#allocation15], %s4219_s16, %s4219_s16, %s4220_s19  }
  0x34   : > { %s49_s29 = ssub.s32 %s3265_s21, %s3474_s26  ;;  %s52_s17 = sadd.s32 1, %s3261_s20 }
  0x35   : > { %p50_p7 = scmp.eq.s32.totalorder %s49_s29, 0  ;;  %p59_p8 = scmp.ne.s32.totalorder %s3261_s20, %s3257_s30 }
  0x36   : > { %p60_p9 = scmp.eq.s32.totalorder %s3265_s21, 0  ;;  %p65_p10 = scmp.ne.s32.totalorder %s3257_s30, %s3253_s0 }
  0x37   : > { %s3485_s3 = scalar_select %p50_p7, %s3261_s20, %s52_s17  }
  0x38   : > { %p3487_p11 = por %p60_p9, %p59_p8  ;;  %p3493_p12 = por %p66_p1, %p65_p10 }
  0x39   : > { %4253 = sst [smem:[#allocation30_spill]] %s3485_s3  ;;  %p451_p13 = scmp.eq.s32.totalorder %s3412_s24, 1 }
  0x3a   : > { %p457_p0 = scmp.eq.s32.totalorder %s2540_s23, 1  ;;  %p2706_p2 = scmp.lt.s32.totalorder %s3265_s21, 2 }
  0x3b   : > { %s3500_s4 = sand.u32 1, %s3261_s20   ;;  %p3502_p4 = por %p451_p13, %p59_p8 }
  0x3c   : > { %p3506_p6 = por %p457_p0, %p65_p10  ;;  %s2549_s18 = sshll.u32 %s3500_s4, 4 }
  0x3d   : > { %s4256_s8 = scalar_select %p3502_p4, 1, 0 }
  0x3e   : > { %s4258_s28 = scalar_select %p3506_p6, 1, 0 }
  0x3f   : > { %4257 = sst [smem:[#allocation31_spill]] %s4256_s8  ;;  %s2632_s22 = sshll.u32 %s3265_s21, 4 }
  0x40   : > { %4259 = sst [smem:[#allocation32_spill]] %s4258_s28  ;;  %s621_s23 = scalar_lea.vmem [#allocation2], %s2549_s18 }
  0x41   : > { %s4260_s17 = sld [smem:[#allocation33_spill]]  ;;  %s629_s19 = sshll.u32 %s621_s23, 4  ;;  %s630_s19 = int_to_ptr.vmem [resolvable:$true] %s629_s19 }
  0x42   : > { %p3517_p7 = pnand %p2706_p2, %p3487_p11  ;;  %s639_s14 = sand.u32 1, %s3265_s21  }
  0x43   : > { %s618_s3 = scalar_lea.sflag [#allocation3], %s3500_s4 }
  0x44   : > { %p3091_p9 = pneg %p3517_p7 }
  0x47   : > { %s626_s16 = scalar_lea.hbm %s4260_s17, %s2632_s22  ;;  %s3094_s18 = scalar_lea.hbm %s4260_s17, 32 }
  0x48   : > { %s627_s6 = sshll.u32 %s626_s16, 4  ;;  %s628_s6 = int_to_ptr.hbm [resolvable:$true] %s627_s6 }
  0x49   : > { %s3087_s20 = sshra.s32 %s628_s6, 4  ;;  %s3088_s20 = int_to_ptr.hbm [resolvable:$true] %s3087_s20 }
  0x4a   : > { %s3089_s26 = scalar_lea.hbm %s3088_s20, 16  ;;  %p3095_p11 = scmp.lt.s32.totalorder %s3088_s20, %s4260_s17 }
  0x4b   : > { %p3090_p8 = scmp.ne.s32.totalorder %s3088_s20, %s3089_s26  ;;  %p3096_p0 = scmp.lt.s32.totalorder %s3094_s18, %s3089_s26 }
  0x4d   : > { %p3092_p10 = pnand %p3091_p9, %p3090_p8  ;;  %p3097_p2 = por %p3096_p0, %p3095_p11 }
  0x4f   : > { %p3093_p13 = pneg %p3092_p10 }
  0x51   : > { %p3098_p5 = pnand %p3097_p2, %p3093_p13 }
  0x53   : > { %3101 = shalt.err (!%p3098_p5)
}
  0x54   : > { %s4262_s29 = smov 8   ;;  %s4263_s23 = smov 128  }
  0x55   : > { %2689 = dma.hbm_to_vmem [thread:$0]  (!%p3517_p7), %s628_s6, 256, %s630_s19, %s618_s3, %s4263_s23, %s4263_s23, %s4262_s29  }
  0x56   : > { %s4264_s1 = sld [smem:[#allocation34_spill]]  ;;  %s642_s8 = scalar_lea.vmem [#allocation5], %s3500_s4 }
  0x57   : > { %s649_s22 = sshll.u32 %s642_s8, 4  ;;  %s640_s26 = scalar_lea.sflag [#allocation6], %s639_s14  ;;  %s650_s22 = int_to_ptr.vmem [resolvable:$true] %s649_s22 }
  0x5c   : > { %s645_s0 = scalar_lea.hbm %s4264_s1, %s3265_s21  ;;  %s3124_s19 = scalar_lea.hbm %s4264_s1, 2 }
  0x5d   : > { %s647_s20 = sshll.u32 %s645_s0, 4  ;;  %s648_s20 = int_to_ptr.hbm [resolvable:$true] %s647_s20 }
  0x5e   : > { %s3117_s18 = sshra.s32 %s648_s20, 4  ;;  %s3118_s18 = int_to_ptr.hbm [resolvable:$true] %s3117_s18 }
  0x5f   : > { %s3119_s2 = scalar_lea.hbm %s3118_s18, 1  ;;  %p3125_p13 = scmp.lt.s32.totalorder %s3118_s18, %s4264_s1 }
  0x60   : > { %p3120_p5 = scmp.ne.s32.totalorder %s3118_s18, %s3119_s2  ;;  %p3126_p11 = scmp.lt.s32.totalorder %s3124_s19, %s3119_s2 }
  0x62   : > { %p3122_p8 = pnand %p3120_p5, %p3091_p9  ;;  %p3127_p0 = por %p3126_p11, %p3125_p13 }
  0x64   : > { %p3123_p10 = pneg %p3122_p8 }
  0x66   : > { %p3128_p2 = pnand %p3127_p0, %p3123_p10 }
  0x68   : > { %3131 = shalt.err (!%p3128_p2)
}
  0x69   : > { %2692 = dma.hbm_to_vmem [thread:$0]  (!%p3517_p7), %s648_s20, 16, %s650_s22, %s640_s26  }
  0x6a   : > { %658 = sbr.rel (%p3417_p3) target bundleno = 2412 (0x96c), region = 92  ;;  %s3558_s14 = sand.u32 (!%p3417_p3), 1, %s3257_s30  }
  0x6b   : > { %s2553_s0 = sshll.u32 (!%p3417_p3), %s3558_s14, 4  ;;  %s661_s4 = scalar_lea.sflag (!%p3417_p3), [#allocation3], %s3558_s14 }
  0x6c   : > { %s3564_s8 = scalar_lea.vmem (!%p3417_p3), [#allocation2], %s2553_s0 }
  0x6f   : > { %3220 = dma.done.wait (%p3493_p12), %s661_s4, 256  }
  0x70   : > { %3222 = vsyncadd (%p3493_p12), %s661_s4, 4294967040  ;;  %s670_s12 = sand.u32 1, %s3412_s24   ;;  %s673_s17 = scalar_lea.vmem [#allocation5], %s3558_s14 }
  0x71   : > { %s671_s25 = scalar_lea.sflag [#allocation6], %s670_s12 }
  0x72   : > { %3224 = dma.done.wait (%p3493_p12), %s671_s25, 16  }
  0x73   : > { %3226 = vsyncadd (%p3493_p12), %s671_s25, 4294967280 }
  0x74   : > { %3228 = dma.done.wait (%p66_p1), [#allocation6], 2048  }
  0x75   : > { %3230 = vsyncadd (%p66_p1), [#allocation6], 4294965248 }
  0x76   : > { %3232 = dma.done.wait (%p66_p1), [#allocation9], 4096  }
  0x77   : > { %3234 = vsyncadd (%p66_p1), [#allocation9], 4294963200 }
  0x78   : > { %3236 = dma.done.wait (%p66_p1), [#allocation12], 6144  }
  0x79   : > { %3238 = vsyncadd (%p66_p1), [#allocation12], 4294961152 }
  0x7a   : > { %3240 = dma.done.wait (%p66_p1), [#allocation15], 4096  }
  0x7b   : > { %3242 = vsyncadd (%p66_p1), [#allocation15], 4294963200  ;;  %v829_v0 = vld [vmem:[#allocation8 + $0x78] sm:$0xff]  ;;  %v828_v1 = vld [vmem:[#allocation8 + $0x70] sm:$0xff]  ;;  %s4265_s22 = sld [smem:[#allocation36_spill]]  ;;  %vm902_vm0 = vcmask 130048  }
  0x7c   : > { %834 = vmatpush.msra.mxu1 %v829_v0  ;;  %v827_v2 = vld [vmem:[#allocation8 + $0x68] sm:$0xff]  ;;  %v786_v3 = vld [vmem:[#allocation7 + $0x78] sm:$0xff]  ;;  %v785_v4 = vld [vmem:[#allocation7 + $0x70] sm:$0xff]  ;;  %s3277_s20 = smov 96   ;;  %s3278_s26 = smov 112  }
  0x7d   : > { %791 = vmatpush.msra.mxu0 %v786_v3  ;;  %v826_v5 = vld [vmem:[#allocation8 + $0x60] sm:$0xff]  ;;  %v784_v6 = vld [vmem:[#allocation7 + $0x68] sm:$0xff]  ;;  %v825_v7 = vld [vmem:[#allocation8 + $0x58] sm:$0xff]  ;;  %s3279_s18 = smov 80   ;;  %s3280_s2 = smov 64  }
  0x7e   : > { %835 = vmatpush.msra.mxu1 %v828_v1  ;;  %v783_v8 = vld [vmem:[#allocation7 + $0x60] sm:$0xff]  ;;  %v824_v9 = vld [vmem:[#allocation8 + $0x50] sm:$0xff]  ;;  %v782_v10 = vld [vmem:[#allocation7 + $0x58] sm:$0xff]  ;;  %s3281_s6 = smov 48   ;;  %s3282_s28 = smov 32  }
  0x7f   : > { %792 = vmatpush.msra.mxu0 %v785_v4  ;;  %v823_v11 = vld [vmem:[#allocation8 + $0x48] sm:$0xff]  ;;  %v781_v12 = vld [vmem:[#allocation7 + $0x50] sm:$0xff]  ;;  %v872_v13 = vld [vmem:[#allocation10 + $0x78] sm:$0xff]  ;;  %s3283_s4 = smov 16   ;;  %s2561_s12 = sshll.u32 %s3558_s14, 7 }
  0x80   : > { %836 = vmatpush.msra.mxu1 %v827_v2  ;;  %v871_v14 = vld [vmem:[#allocation10 + $0x70] sm:$0xff]  ;;  %v822_v15 = vld [vmem:[#allocation8 + $0x40] sm:$0xff]  ;;  %v780_v16 = vld [vmem:[#allocation7 + $0x48] sm:$0xff]  ;;  %877 = vmatpush.msra.mxu2 %v872_v13  ;;  %s3731_s25 = scalar_lea.vmem [#allocation17], %s2561_s12  ;;  %s2326_s27 = scalar_lea.sflag [#allocation18], %s3558_s14 }
  0x81   : > { %793 = vmatpush.msra.mxu0 %v784_v6  ;;  %v870_v17 = vld [vmem:[#allocation10 + $0x68] sm:$0xff]  ;;  %v821_v18 = vld [vmem:[#allocation8 + $0x38] sm:$0xff]  ;;  %v779_v19 = vld [vmem:[#allocation7 + $0x40] sm:$0xff]  ;;  %s2355_s19 = sshll.u32 %s3731_s25, 4  ;;  %s2356_s19 = int_to_ptr.vmem [resolvable:$true] %s2355_s19 }
  0x82   : > { %837 = vmatpush.msra.mxu1 %v826_v5  ;;  %878 = vmatpush.msra.mxu2 %v871_v14  ;;  %v820_v20 = vld [vmem:[#allocation8 + $0x30] sm:$0xff]  ;;  %v778_v21 = vld [vmem:[#allocation7 + $0x38] sm:$0xff]  ;;  %v869_v22 = vld [vmem:[#allocation10 + $0x60] sm:$0xff] }
  0x83   : > { %794 = vmatpush.msra.mxu0 %v783_v8  ;;  %v819_v23 = vld [vmem:[#allocation8 + $0x28] sm:$0xff]  ;;  %v777_v24 = vld [vmem:[#allocation7 + $0x30] sm:$0xff]  ;;  %v868_v25 = vld [vmem:[#allocation10 + $0x58] sm:$0xff] }
  0x84   : > { %838 = vmatpush.msra.mxu1 %v825_v7  ;;  %879 = vmatpush.msra.mxu2 %v870_v17  ;;  %v867_v26 = vld [vmem:[#allocation10 + $0x50] sm:$0xff]  ;;  %v818_v27 = vld [vmem:[#allocation8 + $0x20] sm:$0xff]  ;;  %v776_v28 = vld [vmem:[#allocation7 + $0x28] sm:$0xff] }
  0x85   : > { %795 = vmatpush.msra.mxu0 %v782_v10  ;;  %v866_v29 = vld [vmem:[#allocation10 + $0x48] sm:$0xff]  ;;  %v817_v30 = vld [vmem:[#allocation8 + $0x18] sm:$0xff]  ;;  %v775_v31 = vld [vmem:[#allocation7 + $0x20] sm:$0xff] }
  0x86   : > { %839 = vmatpush.msra.mxu1 %v824_v9  ;;  %880 = vmatpush.msra.mxu2 %v869_v22  ;;  %v865_v32 = vld [vmem:[#allocation10 + $0x40] sm:$0xff]  ;;  %v816_v33 = vld [vmem:[#allocation8 + $0x10] sm:$0xff]  ;;  %v774_v34 = vld [vmem:[#allocation7 + $0x18] sm:$0xff] }
  0x87   : > { %796 = vmatpush.msra.mxu0 %v781_v12  ;;  %v864_v35 = vld [vmem:[#allocation10 + $0x38] sm:$0xff]  ;;  %v815_v36 = vld [vmem:[#allocation8 + $0x8] sm:$0xff]  ;;  %v773_v37 = vld [vmem:[#allocation7 + $0x10] sm:$0xff]  ;;  %v3284_v12 = vmov 0  }
  0x88   : > { %840 = vmatpush.msra.mxu1 %v823_v11  ;;  %881 = vmatpush.msra.mxu2 %v868_v25  ;;  %v863_v38 = vld [vmem:[#allocation10 + $0x30] sm:$0xff]  ;;  %v814_v39 = vld [vmem:[#allocation8] sm:$0xff]  ;;  %v772_v40 = vld [vmem:[#allocation7 + $0x8] sm:$0xff] }
  0x89   : > { %797 = vmatpush.msra.mxu0 %v780_v16  ;;  %v768_v41 = vld [vmem:[%s3564_s8] sm:$0xff]  ;;  %v769_v47 = vld [vmem:[%s3564_s8 + $0x8] sm:$0xff] }
  0x8a   : > { %841 = vmatpush.msra.mxu1 %v822_v15  ;;  %882 = vmatpush.msra.mxu2 %v867_v26  ;;  %v862_v42 = vld [vmem:[#allocation10 + $0x28] sm:$0xff]  ;;  %v771_v43 = vld [vmem:[#allocation7] sm:$0xff]  ;;  %v860_v45 = vld [vmem:[#allocation10 + $0x18] sm:$0xff] }
  0x8b   : > { %798 = vmatpush.msra.mxu0 %v779_v19  ;;  %v861_v44 = vld [vmem:[#allocation10 + $0x20] sm:$0xff]  ;;  %v859_v46 = vld [vmem:[#allocation10 + $0x10] sm:$0xff]  ;;  %v858_v48 = vld [vmem:[#allocation10 + $0x8] sm:$0xff] }
  0x8c   : > { %842 = vmatpush.msra.mxu1 %v821_v18  ;;  %883 = vmatpush.msra.mxu2 %v866_v29  ;;  %v857_v49 = vld [vmem:[#allocation10] sm:$0xff]  ;;  %v2822_v52 = vld [vmem:[%s4200_s5] ss:$0 sm:$0xff] }
  0x8d   : > { %799 = vmatpush.msra.mxu0 %v778_v21  ;;  %v2823_v53 = vld [vmem:[%s4265_s22] ss:$0 sm:$0xff] }
  0x8e   : > { %843 = vmatpush.msra.mxu1 %v820_v20  ;;  %884 = vmatpush.msra.mxu2 %v865_v32  ;;  %v2824_v63 = vld [vmem:[%s4202_s7] ss:$0 sm:$0xff] }
  0x8f   : > { %800 = vmatpush.msra.mxu0 %v777_v24  ;;  %v770_v10 = vld [vmem:[%s673_s17] sm:$0x1] }
  0x90   : > { %844 = vmatpush.msra.mxu1 %v819_v23  ;;  %885 = vmatpush.msra.mxu2 %v864_v35  ;;  %vm938_vm1 = vcmp.eq.f32.partialorder %v770_v10, 0.0 }
  0x91   : > { %801 = vmatpush.msra.mxu0 %v776_v28  ;;  %v939_v13 = vsel %vm938_vm1, 1, %v3284_v12 }
  0x92   : > { %845 = vmatpush.msra.mxu1 %v818_v27  ;;  %886 = vmatpush.msra.mxu2 %v863_v38  ;;  %v940_v15 = vperm.slane %v939_v13, 0 }
  0x93   : > { %802 = vmatpush.msra.mxu0 %v775_v31 }
  0x94   : > { %846 = vmatpush.msra.mxu1 %v817_v30  ;;  %887 = vmatpush.msra.mxu2 %v862_v42  ;;  %vm3673_vm2 = vcmp.eq.s32.totalorder %v940_v15, 1 }
  0x95   : > { %803 = vmatpush.msra.mxu0 %v774_v34 }
  0x96   : > { %847 = vmatpush.msra.mxu1 %v816_v33  ;;  %888 = vmatpush.msra.mxu2 %v861_v44 }
  0x97   : > { %804 = vmatpush.msra.mxu0 %v773_v37 }
  0x98   : > { %848 = vmatpush.msra.mxu1 %v815_v36  ;;  %889 = vmatpush.msra.mxu2 %v860_v45 }
  0x99   : > { %805 = vmatpush.msra.mxu0 %v772_v40 }
  0x9a   : > { %849 = vmatpush.msra.mxu1 %v814_v39  ;;  %890 = vmatpush.msra.mxu2 %v859_v46 }
  0x9b   : > { %850 = vmatmul.f32.vlgmr.msra.gmra.mxu1 %v768_v41  ;;  %806 = vmatpush.msra.mxu0 %v771_v43 }
  0x9c   : > { %807 = vmatmul.f32.vlgmr.msra.gmra.mxu0 %v768_v41  ;;  %891 = vmatpush.msra.mxu2 %v858_v48 }
  0x9e   : > { %892 = vmatpush.msra.mxu2 %v857_v49 }
  0x9f   : > { %893 = vmatmul.f32.vlgmr.msra.gmra.mxu2 %v768_v41 }
  0xa3   : > { %853 = vmatmul.f32.gmra.mxu1 %v769_v47 }
  0xa4   : > { %810 = vmatmul.f32.gmra.mxu0 %v769_v47 }
  0xa7   : > { %896 = vmatmul.f32.gmra.mxu2 %v769_v47 }
 0x118   : > { %v851_v50 = vpop.f32.mrf.mxu1 }
 0x119   : > { %v808_v51 = vpop.f32.mrf.mxu0  ;;  %v3608_v57 = vadd.f32 %v2822_v52, %v851_v50 }
 0x11a   : > { %v809_v56 = vadd.f32 %v2823_v53, %v808_v51 }
 0x11c   : > { %v3610_v58 = vmul.f32 0.25, %v809_v56 }
 0x120   : > { %v854_v54 = vpop.f32.mrf.mxu1 }
 0x121   : > { %v3600_v55 = vadd.f32 %v2822_v52, %v854_v54  ;;  %v811_v59 = vpop.f32.mrf.mxu0 }
 0x122   : > { %v812_v60 = vadd.f32 %v2823_v53, %v811_v59  ;;  %v894_v62 = vpop.f32.mrf.mxu2 }
 0x123   : > { %1158 = vrot.lane.b32.xlu1 %v3600_v55, %s3277_s20  ;;  %1029 = vrot.lane.b32.xlu2 %v3600_v55, %s3278_s26  ;;  %v3643_v1 = vadd.f32 %v2824_v63, %v894_v62 }
 0x124   : > { %2562 = vmatpush.xpose.msk.msra.mxu3 %vm902_vm0, %v3600_v55  ;;  %v3620_v61 = vmul.f32 0.25, %v812_v60 }
 0x128   : > { %2563 = vmatpush.xpose.msk.msra.mxu3 %vm902_vm0, %v3608_v57 }
 0x12a   : > { %v897_v0 = vpop.f32.mrf.mxu2 }
 0x12b   : > { %2564 = vmatmul.msk.f32.vlgmr.msra.gmra.mxu3 %vm902_vm0, %v3610_v58  ;;  %1027 = vrot.lane.b32.xlu2 %v3608_v57, %s3278_s26  ;;  %v3645_v2 = vadd.f32 %v2824_v63, %v897_v0 }
 0x12c   : > { %1279 = vrot.lane.b32.xlu1 %v3610_v58, %s3279_s18 }
 0x12d   : > { %1014 = vmatpush.msrb.mxu3 %v3645_v2 }
 0x12f   : > { %1015 = vmatpush.msrb.mxu3 %v3643_v1 }
 0x133   : > { %2565 = vmatmul.msk.f32.gmra.mxu3 %vm902_vm0, %v3620_v61  ;;  %1156 = vrot.lane.b32.xlu2 %v3608_v57, %s3277_s20 }
 0x134   : > { %1412 = vrot.lane.b32.xlu1 %v3600_v55, %s3280_s2 }
 0x13b   : > { %1025 = vrot.lane.b32.xlu2 %v3620_v61, %s3278_s26 }
 0x13c   : > { %1537 = vrot.lane.b32.xlu1 %v3608_v57, %s3281_s6 }
 0x143   : > { %1152 = vrot.lane.b32.xlu2 %v3610_v58, %s3277_s20 }
 0x144   : > { %1408 = vrot.lane.b32.xlu1 %v3620_v61, %s3280_s2 }
 0x14b   : > { %1283 = vrot.lane.b32.xlu2 %v3608_v57, %s3279_s18 }
 0x153   : > { %1281 = vrot.lane.b32.xlu2 %v3620_v61, %s3279_s18 }
 0x15b   : > { %1410 = vrot.lane.b32.xlu2 %v3608_v57, %s3280_s2 }
 0x163   : > { %1533 = vrot.lane.b32.xlu2 %v3610_v58, %s3281_s6 }
 0x16b   : > { %1666 = vrot.lane.b32.xlu2 %v3600_v55, %s3282_s28 }
 0x173   : > { %1791 = vrot.lane.b32.xlu2 %v3608_v57, %s3283_s4 }
 0x17b   : > { %1662 = vrot.lane.b32.xlu2 %v3620_v61, %s3282_s28 }
 0x17d   : > { %v1030_v3 = vpop.permute.xlu2 %1029 }
 0x17e   : > { %2568 = vmatpush.xpose.msk.msra.mxu3 %vm902_vm0, %v1030_v3 }
 0x185   : > { %v1028_v4 = vpop.permute.xlu2 %1027 }
 0x186   : > { %2569 = vmatpush.xpose.msk.msra.mxu3 %vm902_vm0, %v1028_v4 }
 0x18d   : > { %v1157_v5 = vpop.permute.xlu2 %1156 }
 0x195   : > { %v1159_v6 = vpop.permute.xlu1 %1158  ;;  %v3661_v7 = vpop.permute.xlu2 %1025 }
 0x196   : > { %2576 = vmatpush.xpose.msk.msrb.mxu2 %vm902_vm0, %v1159_v6 }
 0x19a   : > { %2577 = vmatpush.xpose.msk.msrb.mxu2 %vm902_vm0, %v1157_v5 }
 0x19d   : > { %v1153_v8 = vpop.permute.xlu2 %1152 }
 0x19e   : > { %v3665_v9 = vpop.permute.xlu1 %1279  ;;  %2578 = vmatmul.msk.f32.vlgmr.msrb.gmra.mxu2 %vm902_vm0, %v1153_v8 }
 0x1a5   : > { %v3670_v11 = vpop.permute.xlu2 %1283 }
 0x1a6   : > { %v1413_v14 = vpop.permute.xlu1 %1412 }
 0x1a7   : > { %2592 = vmatpush.xpose.msk.msrb.mxu1 %vm902_vm0, %v1413_v14 }
 0x1ad   : > { %v3677_v17 = vpop.permute.xlu2 %1281 }
 0x1ae   : > { %v932_v18 = vpop.f32.mrf.mxu3  ;;  %v1538_v41 = vpop.permute.xlu1 %1537 }
 0x1af   : > { %v942_v19 = vsel %vm3673_vm2, -1e+09, %v932_v18 }
 0x1b0   : > { %v944_v20 = vsel %vm902_vm0, %v942_v19, -inf }
 0x1b1   : > { %945 = vmax.xlane.f32.xlu0 %v944_v20 }
 0x1b5   : > { %v1411_v21 = vpop.permute.xlu2 %1410 }
 0x1b6   : > { %v935_v22 = vpop.f32.mrf.mxu3  ;;  %2593 = vmatpush.xpose.msk.msrb.mxu1 %vm902_vm0, %v1411_v21  ;;  %v1409_v43 = vpop.permute.xlu1 %1408 }
 0x1b7   : > { %v943_v23 = vsel %vm3673_vm2, -1e+09, %v935_v22 }
 0x1b8   : > { %v947_v24 = vsel %vm902_vm0, %v943_v23, -inf }
 0x1b9   : > { %948 = vmax.xlane.f32.xlu0 %v947_v24 }
 0x1bd   : > { %v3686_v25 = vpop.permute.xlu2 %1533 }
 0x1c5   : > { %v1667_v26 = vpop.permute.xlu2 %1666 }
 0x1c6   : > { %2608 = vmatpush.xpose.msk.msra.mxu1 %vm902_vm0, %v1667_v26 }
 0x1cd   : > { %1023 = vrot.lane.b32.xlu0 %v3610_v58, %s3278_s26  ;;  %v1792_v15 = vpop.permute.xlu2 %1791 }
 0x1d5   : > { %1285 = vrot.lane.b32.xlu0 %v3600_v55, %s3279_s18 }
 0x1dd   : > { %1154 = vrot.lane.b32.xlu0 %v3620_v61, %s3277_s20 }
 0x1e5   : > { %1539 = vrot.lane.b32.xlu0 %v3600_v55, %s3281_s6 }
 0x1ed   : > { %1406 = vrot.lane.b32.xlu0 %v3610_v58, %s3280_s2 }
 0x1f5   : > { %1535 = vrot.lane.b32.xlu0 %v3620_v61, %s3281_s6 }
 0x1fd   : > { %1664 = vrot.lane.b32.xlu0 %v3608_v57, %s3282_s28 }
 0x205   : > { %1787 = vrot.lane.b32.xlu0 %v3610_v58, %s3283_s4 }
 0x221   : > { %v1185_v46 = vpop.f32.mrf.mxu2 }
 0x222   : > { %v3726_v47 = vsel %vm3673_vm2, -1e+09, %v1185_v46 }
 0x223   : > { %v1193_v48 = vsel %vm902_vm0, %v3726_v47, -inf }
 0x224   : > { %v946_v27 = vpop.xlane.xlu0 %945 }
 0x225   : > { %v950_v28 = vsub.f32 %v942_v19, %v946_v27  ;;  %v1663_v19 = vpop.permute.xlu2 %1662 }
 0x227   : > { %v952_v29 = vmul.f32 1.442695, %v950_v28  ;;  %v3776_v28 = vpack.i.bf16 %v3643_v1, %v3645_v2 }
 0x229   : > { %2831 = vpow2.f32 %v952_v29 }
 0x22c   : > { %v949_v30 = vpop.xlane.xlu0 %948 }
 0x22d   : > { %v951_v31 = vsub.f32 %v943_v23, %v949_v30 }
 0x22f   : > { %v2832_v32 = vpop.eup %2831  ;;  %v954_v33 = vmul.f32 1.442695, %v951_v31 }
 0x230   : > { %v956_v34 = vsel %vm902_vm0, %v2832_v32, 0.0 }
 0x231   : > { %2833 = vpow2.f32 %v954_v33  ;;  %957 = vadd.xlane.f32.xlu1 %v956_v34 }
 0x237   : > { %v3706_v35 = vpop.eup %2833 }
 0x238   : > { %v959_v36 = vsel %vm902_vm0, %v3706_v35, 0.0 }
 0x239   : > { %960 = vadd.xlane.f32.xlu1 %v959_v36 }
 0x23f   : > { %v3710_v37 = vpop.permute.xlu0 %1023 }
 0x247   : > { %v1286_v38 = vpop.permute.xlu0 %1285 }
 0x24f   : > { %v1155_v39 = vpop.permute.xlu0 %1154 }
 0x250   : > { %2579 = vmatmul.msk.f32.gmra.mxu2 %vm902_vm0, %v1155_v39 }
 0x252   : > { %1793 = vrot.lane.b32.xlu1 %v3600_v55, %s3283_s4 }
 0x257   : > { %v1540_v40 = vpop.permute.xlu0 %1539 }
 0x25a   : > { %1660 = vrot.lane.b32.xlu1 %v3610_v58, %s3282_s28 }
 0x25f   : > { %v1407_v42 = vpop.permute.xlu0 %1406 }
 0x260   : > { %2594 = vmatmul.msk.f32.vlgmr.msrb.gmra.mxu1 %vm902_vm0, %v1407_v42 }
 0x262   : > { %1789 = vrot.lane.b32.xlu1 %v3620_v61, %s3283_s4 }
 0x267   : > { %v3720_v44 = vpop.permute.xlu0 %1535 }
 0x268   : > { %2595 = vmatmul.msk.f32.gmra.mxu1 %vm902_vm0, %v1409_v43 }
 0x26f   : > { %v1665_v45 = vpop.permute.xlu0 %1664 }
 0x270   : > { %2609 = vmatpush.xpose.msk.msra.mxu1 %vm902_vm0, %v1665_v45 }
 0x277   : > { %v1788_v27 = vpop.permute.xlu0 %1787 }
 0x28c   : > { %1194 = vmax.xlane.f32.xlu1 %v1193_v48 }
 0x2a4   : > { %v958_v49 = vpop.xlane.xlu1 %957 }
 0x2a5   : > { %2835 = vrcp.f32 %v958_v49  ;;  %v973_v54 = vand.u32 2147483648, %v958_v49  ;;  %v971_v56 = vand.u32 2147483647, %v958_v49  ;;  %vm967_vm4 = vweird.f32 %v958_v49 }
 0x2a7   : > { %v974_v59 = vor.u32 1.1754944e-38, %v973_v54  ;;  %vm972_vm6 = vcmp.eq.f32.partialorder %v971_v56, 8.507059e+37 }
 0x2ab   : > { %v2836_v50 = vpop.eup %2835 }
 0x2ac   : > { %v963_v51 = vmul.f32 %v2836_v50, %v958_v49  ;;  %v961_v52 = vpop.xlane.xlu1 %960  ;;  %vm968_vm3 = vweird.f32 %v2836_v50 }
 0x2ad   : > { %2837 = vrcp.f32 %v961_v52  ;;  %vm969_vm5 = vmor %vm967_vm4, %vm968_vm3  ;;  %v988_v3 = vand.u32 2147483648, %v961_v52  ;;  %v986_v5 = vand.u32 2147483647, %v961_v52  ;;  %vm982_vm8 = vweird.f32 %v961_v52 }
 0x2ae   : > { %v964_v53 = vsub.f32 1.0, %v963_v51 }
 0x2af   : > { %v989_v8 = vor.u32 1.1754944e-38, %v988_v3  ;;  %vm987_vm10 = vcmp.eq.f32.partialorder %v986_v5, 8.507059e+37 }
 0x2b0   : > { %v965_v55 = vmul.f32 %v2836_v50, %v964_v53 }
 0x2b2   : > { %v966_v57 = vadd.f32 %v2836_v50, %v965_v55 }
 0x2b3   : > { %v2838_v58 = vpop.eup %2837 }
 0x2b4   : > { %v978_v60 = vmul.f32 %v2838_v58, %v961_v52  ;;  %v970_v61 = vsel %vm969_vm5, %v2836_v50, %v966_v57  ;;  %vm983_vm7 = vweird.f32 %v2838_v58 }
 0x2b5   : > { %v975_v62 = vsel %vm972_vm6, %v974_v59, %v970_v61  ;;  %vm984_vm9 = vmor %vm982_vm8, %vm983_vm7 }
 0x2b6   : > { %v979_v63 = vsub.f32 1.0, %v978_v60  ;;  %v976_v0 = vmul.f32 %v2832_v32, %v975_v62 }
 0x2b8   : > { %v980_v4 = vmul.f32 %v2838_v58, %v979_v63  ;;  %992 = vst.msk [vmem:[%s3731_s25] sm:$0xff] %vm902_vm0, %v976_v0  ;;  %2566 = vmatmul.msk.f32.vlgmr.msrb.gmra.mxu3 %vm902_vm0, %v976_v0 }
 0x2b9   : > { %2584 = vmatpush.xpose.msk.msrb.mxu3 %vm902_vm0, %v1286_v38 }
 0x2ba   : > { %v981_v6 = vadd.f32 %v2838_v58, %v980_v4 }
 0x2bc   : > { %v985_v10 = vsel %vm984_vm9, %v2838_v58, %v981_v6 }
 0x2bd   : > { %2585 = vmatpush.xpose.msk.msrb.mxu3 %vm902_vm0, %v3670_v11  ;;  %v990_v12 = vsel %vm987_vm10, %v989_v8, %v985_v10 }
 0x2be   : > { %v991_v13 = vmul.f32 %v3706_v35, %v990_v12 }
 0x2c0   : > { %993 = vst.msk [vmem:[%s3731_s25 + $0x8] sm:$0xff] %vm902_vm0, %v991_v13  ;;  %2567 = vmatmul.msk.f32.gmra.mxu3 %vm902_vm0, %v991_v13 }
 0x2c4   : > { %v1794_v14 = vpop.permute.xlu1 %1793 }
 0x2c8   : > { %2570 = vmatmul.msk.f32.vlgmr.msra.gmra.mxu3 %vm902_vm0, %v3710_v37 }
 0x2c9   : > { %2600 = vmatpush.xpose.msk.msra.mxu3 %vm902_vm0, %v1540_v40 }
 0x2cc   : > { %v1661_v18 = vpop.permute.xlu1 %1660 }
 0x2cd   : > { %2601 = vmatpush.xpose.msk.msra.mxu3 %vm902_vm0, %v1538_v41  ;;  %2610 = vmatmul.msk.f32.vlgmr.msra.gmra.mxu1 %vm902_vm0, %v1661_v18 }
 0x2d0   : > { %2571 = vmatmul.msk.f32.gmra.mxu3 %vm902_vm0, %v3661_v7 }
 0x2d3   : > { %v1188_v11 = vpop.f32.mrf.mxu2 }
 0x2d4   : > { %v1192_v20 = vsel %vm3673_vm2, -1e+09, %v1188_v11 }
 0x2d5   : > { %2611 = vmatmul.msk.f32.gmra.mxu1 %vm902_vm0, %v1663_v19  ;;  %v1196_v21 = vsel %vm902_vm0, %v1192_v20, -inf }
 0x2d6   : > { %1197 = vmax.xlane.f32.xlu2 %v1196_v21 }
 0x2d8   : > { %2586 = vmatmul.msk.f32.vlgmr.msrb.gmra.mxu3 %vm902_vm0, %v3665_v9 }
 0x2d9   : > { %2616 = vmatpush.xpose.msk.msrb.mxu3 %vm902_vm0, %v1794_v14 }
 0x2dd   : > { %2617 = vmatpush.xpose.msk.msrb.mxu3 %vm902_vm0, %v1792_v15  ;;  %v1439_v22 = vpop.f32.mrf.mxu1 }
 0x2de   : > { %v1445_v7 = vsel %vm3673_vm2, -1e+09, %v1439_v22 }
 0x2df   : > { %v1447_v23 = vsel %vm902_vm0, %v1445_v7, -inf }
 0x2e0   : > { %2587 = vmatmul.msk.f32.gmra.mxu3 %vm902_vm0, %v3677_v17  ;;  %1448 = vmax.xlane.f32.xlu0 %v1447_v23  ;;  %v1790_v17 = vpop.permute.xlu1 %1789 }
 0x2e5   : > { %v1442_v24 = vpop.f32.mrf.mxu1 }
 0x2e6   : > { %v3765_v26 = vsel %vm3673_vm2, -1e+09, %v1442_v24 }
 0x2e7   : > { %v1450_v9 = vsel %vm902_vm0, %v3765_v26, -inf }
 0x2e8   : > { %2602 = vmatmul.msk.f32.vlgmr.msra.gmra.mxu3 %vm902_vm0, %v3686_v25  ;;  %1451 = vmax.xlane.f32.xlu1 %v1450_v9 }
 0x2f0   : > { %2603 = vmatmul.msk.f32.gmra.mxu3 %vm902_vm0, %v3720_v44 }
 0x2f8   : > { %2618 = vmatmul.msk.f32.vlgmr.msrb.gmra.mxu3 %vm902_vm0, %v1788_v27 }
 0x2ff   : > { %v1195_v25 = vpop.xlane.xlu1 %1194 }
 0x300   : > { %2619 = vmatmul.msk.f32.gmra.mxu3 %vm902_vm0, %v1790_v17  ;;  %v1199_v30 = vsub.f32 %v3726_v47, %v1195_v25 }
 0x301   : > { %2773 = vrot.lane.b32.xlu1 %v3776_v28, %s3277_s20 }
 0x302   : > { %v1201_v32 = vmul.f32 1.442695, %v1199_v30 }
 0x304   : > { %2839 = vpow2.f32 %v1201_v32 }
 0x30a   : > { %v3792_v38 = vpop.eup %2839 }
 0x30b   : > { %v1205_v42 = vsel %vm902_vm0, %v3792_v38, 0.0 }
 0x33b   : > { %v3781_v29 = vpop.f32.mrf.mxu3 }
 0x343   : > { %v3784_v31 = vpop.f32.mrf.mxu3 }
 0x349   : > { %v1198_v33 = vpop.xlane.xlu2 %1197 }
 0x34a   : > { %v1693_v34 = vpop.f32.mrf.mxu1  ;;  %v1200_v35 = vsub.f32 %v1192_v20, %v1198_v33 }
 0x34b   : > { %v3788_v1 = vsel %vm3673_vm2, -1e+09, %v1693_v34  ;;  %v1056_v2 = vpop.f32.mrf.mxu3 }
 0x34c   : > { %v1701_v36 = vsel %vm902_vm0, %v3788_v1, -inf  ;;  %v1203_v37 = vmul.f32 1.442695, %v1200_v35  ;;  %v3846_v12 = vsel %vm3673_vm2, -1e+09, %v1056_v2 }
 0x34d   : > { %1702 = vmax.xlane.f32.xlu2 %v1701_v36  ;;  %v1064_v13 = vsel %vm902_vm0, %v3846_v12, -inf }
 0x34e   : > { %2841 = vpow2.f32 %v1203_v37 }
 0x352   : > { %v1696_v39 = vpop.f32.mrf.mxu1 }
 0x353   : > { %v3796_v40 = vsel %vm3673_vm2, -1e+09, %v1696_v39  ;;  %v1059_v41 = vpop.f32.mrf.mxu3  ;;  %v1449_v44 = vpop.xlane.xlu0 %1448 }
 0x354   : > { %v1704_v43 = vsel %vm902_vm0, %v3796_v40, -inf  ;;  %v3802_v45 = vpop.eup %2841  ;;  %v1453_v46 = vsub.f32 %v1445_v7, %v1449_v44  ;;  %v3808_v50 = vsel %vm3673_vm2, -1e+09, %v1059_v41 }
 0x355   : > { %1206 = vadd.xlane.f32.xlu2 %v1205_v42  ;;  %1705 = vmax.xlane.f32.xlu0 %v1704_v43  ;;  %v1208_v48 = vsel %vm902_vm0, %v3802_v45, 0.0  ;;  %v1067_v53 = vsel %vm902_vm0, %v3808_v50, -inf }
 0x356   : > { %v1455_v49 = vmul.f32 1.442695, %v1453_v46 }
 0x358   : > { %2843 = vpow2.f32 %v1455_v49 }
 0x35b   : > { %v1312_v47 = vpop.f32.mrf.mxu3  ;;  %v3822_v56 = vpop.xlane.xlu1 %1451 }
 0x35c   : > { %v3852_v14 = vsel %vm3673_vm2, -1e+09, %v1312_v47 }
 0x35d   : > { %1209 = vadd.xlane.f32.xlu2 %v1208_v48  ;;  %v1320_v15 = vsel %vm902_vm0, %v3852_v14, -inf }
 0x35e   : > { %v3818_v55 = vpop.eup %2843 }
 0x35f   : > { %v1459_v58 = vsel %vm902_vm0, %v3818_v55, 0.0 }
 0x363   : > { %v1315_v51 = vpop.f32.mrf.mxu3 }
 0x364   : > { %v3812_v52 = vsel %vm3673_vm2, -1e+09, %v1315_v51 }
 0x365   : > { %1068 = vmax.xlane.f32.xlu2 %v1067_v53  ;;  %v1323_v54 = vsel %vm902_vm0, %v3812_v52, -inf }
 0x366   : > { %1324 = vmax.xlane.f32.xlu1 %v1323_v54 }
 0x369   : > { %2768 = vrot.lane.b32.xlu0 %v3776_v28, %s3278_s26 }
 0x36b   : > { %v1566_v57 = vpop.f32.mrf.mxu3 }
 0x36c   : > { %v3828_v59 = vsel %vm3673_vm2, -1e+09, %v1566_v57 }
 0x36d   : > { %1460 = vadd.xlane.f32.xlu2 %v1459_v58  ;;  %v1574_v63 = vsel %vm902_vm0, %v3828_v59, -inf }
 0x373   : > { %v2774_v60 = vpop.permute.xlu1 %2773  ;;  %v1569_v61 = vpop.f32.mrf.mxu3 }
 0x374   : > { %v2775_v62 = vunpack.i.l.bf16 %v2774_v60  ;;  %v2776_v0 = vunpack.i.h.bf16 %v2774_v60  ;;  %v3858_v18 = vsel %vm3673_vm2, -1e+09, %v1569_v61 }
 0x375   : > { %1575 = vmax.xlane.f32.xlu2 %v1574_v63  ;;  %v1577_v11 = vsel %vm902_vm0, %v3858_v18, -inf }
 0x376   : > { %1270 = vmatpush.msra.mxu2 %v2775_v62 }
 0x378   : > { %1271 = vmatpush.msra.mxu2 %v2776_v0 }
 0x37b   : > { %v1820_v3 = vpop.f32.mrf.mxu3 }
 0x37c   : > { %v3834_v4 = vsel %vm3673_vm2, -1e+09, %v1820_v3 }
 0x37d   : > { %v1828_v5 = vsel %vm902_vm0, %v3834_v4, -inf }
 0x37e   : > { %1829 = vmax.xlane.f32.xlu1 %v1828_v5 }
 0x383   : > { %v1823_v6 = vpop.f32.mrf.mxu3 }
 0x384   : > { %v3840_v8 = vsel %vm3673_vm2, -1e+09, %v1823_v6 }
 0x385   : > { %v1831_v10 = vsel %vm902_vm0, %v3840_v8, -inf }
 0x386   : > { %1832 = vmax.xlane.f32.xlu1 %v1831_v10 }
 0x393   : > { %1065 = vmax.xlane.f32.xlu0 %v1064_v13 }
 0x39b   : > { %1321 = vmax.xlane.f32.xlu0 %v1320_v15 }
 0x39f   : > { %2783 = vrot.lane.b32.xlu1 %v3776_v28, %s3280_s2 }
 0x3a3   : > { %1578 = vmax.xlane.f32.xlu0 %v1577_v11 }
 0x3c0   : > { %v3864_v19 = vpop.xlane.xlu2 %1702 }
 0x3c8   : > { %v1207_v20 = vpop.xlane.xlu2 %1206  ;;  %v3866_v16 = vpop.xlane.xlu0 %1705 }
 0x3c9   : > { %2845 = vrcp.f32 %v1207_v20  ;;  %v1222_v24 = vand.u32 2147483648, %v1207_v20  ;;  %v1220_v27 = vand.u32 2147483647, %v1207_v20  ;;  %vm1216_vm12 = vweird.f32 %v1207_v20 }
 0x3cb   : > { %v1223_v30 = vor.u32 1.1754944e-38, %v1222_v24  ;;  %vm1221_vm14 = vcmp.eq.f32.partialorder %v1220_v27, 8.507059e+37 }
 0x3cf   : > { %v2846_v21 = vpop.eup %2845 }
 0x3d0   : > { %v1212_v22 = vmul.f32 %v2846_v21, %v1207_v20  ;;  %v1210_v7 = vpop.xlane.xlu2 %1209  ;;  %vm1217_vm11 = vweird.f32 %v2846_v21 }
 0x3d1   : > { %2847 = vrcp.f32 %v1210_v7  ;;  %vm1218_vm13 = vmor %vm1216_vm12, %vm1217_vm11  ;;  %v1237_v43 = vand.u32 2147483648, %v1210_v7  ;;  %v1235_v46 = vand.u32 2147483647, %v1210_v7  ;;  %vm1231_vm1 = vweird.f32 %v1210_v7 }
 0x3d2   : > { %v1213_v23 = vsub.f32 1.0, %v1212_v22 }
 0x3d3   : > { %v1238_v49 = vor.u32 1.1754944e-38, %v1237_v43  ;;  %vm1236_vm3 = vcmp.eq.f32.partialorder %v1235_v46, 8.507059e+37 }
 0x3d4   : > { %v1214_v9 = vmul.f32 %v2846_v21, %v1213_v23 }
 0x3d6   : > { %v1215_v17 = vadd.f32 %v2846_v21, %v1214_v9  ;;  %v1707_v9 = vsub.f32 %v3788_v1, %v3864_v19 }
 0x3d7   : > { %v2848_v25 = vpop.eup %2847 }
 0x3d8   : > { %v1219_v32 = vsel %vm1218_vm13, %v2846_v21, %v1215_v17  ;;  %v1227_v33 = vmul.f32 %v2848_v25, %v1210_v7  ;;  %v1069_v34 = vpop.xlane.xlu2 %1068  ;;  %vm1232_vm15 = vweird.f32 %v2848_v25  ;;  %v1454_v21 = vsub.f32 %v3765_v26, %v3822_v56 }
 0x3d9   : > { %v1224_v35 = vsel %vm1221_vm14, %v1223_v30, %v1219_v32  ;;  %v1071_v2 = vsub.f32 %v3808_v50, %v1069_v34  ;;  %vm1233_vm2 = vmor %vm1231_vm1, %vm1232_vm15  ;;  %v1325_v13 = vpop.xlane.xlu1 %1324  ;;  %v1709_v56 = vmul.f32 1.442695, %v1707_v9  ;;  %v1708_v34 = vsub.f32 %v3796_v40, %v3866_v16 }
 0x3da   : > { %v1228_v36 = vsub.f32 1.0, %v1227_v33  ;;  %v1225_v37 = vmul.f32 %v3792_v38, %v1224_v35  ;;  %v1457_v23 = vmul.f32 1.442695, %v1454_v21  ;;  %v1327_v17 = vsub.f32 %v3812_v52, %v1325_v13 }
 0x3db   : > { %v1074_v39 = vmul.f32 1.442695, %v1071_v2  ;;  %v2769_v41 = vpop.permute.xlu0 %2768 }
 0x3dc   : > { %v1229_v42 = vmul.f32 %v2848_v25, %v1228_v36  ;;  %2580 = vst.msk [vmem:[%s3731_s25 + $0x20] sm:$0xff] %vm902_vm0, %v1225_v37  ;;  %2582 = vmatmul.msk.f32.vlgmr.msra.gmra.mxu2 %vm902_vm0, %v1225_v37  ;;  %v2770_v44 = vunpack.i.l.bf16 %v2769_v41  ;;  %v2771_v47 = vunpack.i.h.bf16 %v2769_v41 }
 0x3dd   : > { %2849 = vpow2.f32 %v1074_v39 }
 0x3de   : > { %1143 = vmatpush.msrb.mxu0 %v2770_v44  ;;  %v1230_v48 = vadd.f32 %v2848_v25, %v1229_v42 }
 0x3e0   : > { %v1461_v38 = vpop.xlane.xlu2 %1460  ;;  %1144 = vmatpush.msrb.mxu0 %v2771_v47  ;;  %v1234_v50 = vsel %vm1233_vm2, %v2848_v25, %v1230_v48 }
 0x3e1   : > { %2851 = vrcp.f32 %v1461_v38  ;;  %v1239_v51 = vsel %vm1236_vm3, %v1238_v49, %v1234_v50  ;;  %v1476_v62 = vand.u32 2147483648, %v1461_v38  ;;  %v1474_v0 = vand.u32 2147483647, %v1461_v38 }
 0x3e2   : > { %v1240_v54 = vmul.f32 %v3802_v45, %v1239_v51  ;;  %vm1470_vm5 = vweird.f32 %v1461_v38 }
 0x3e3   : > { %v3873_v53 = vpop.eup %2849  ;;  %v1477_v45 = vor.u32 1.1754944e-38, %v1476_v62  ;;  %vm1475_vm7 = vcmp.eq.f32.partialorder %v1474_v0, 8.507059e+37 }
 0x3e4   : > { %v1079_v57 = vsel %vm902_vm0, %v3873_v53, 0.0  ;;  %2581 = vst.msk [vmem:[%s3731_s25 + $0x28] sm:$0xff] %vm902_vm0, %v1240_v54  ;;  %2583 = vmatmul.msk.f32.gmra.mxu2 %vm902_vm0, %v1240_v54 }
 0x3e5   : > { %1080 = vadd.xlane.f32.xlu0 %v1079_v57 }
 0x3e7   : > { %v2852_v58 = vpop.eup %2851 }
 0x3e8   : > { %v1466_v60 = vmul.f32 %v2852_v58, %v1461_v38  ;;  %vm1471_vm4 = vweird.f32 %v2852_v58  ;;  %v1576_v39 = vpop.xlane.xlu2 %1575 }
 0x3e9   : > { %vm1472_vm6 = vmor %vm1470_vm5, %vm1471_vm4  ;;  %v1580_v40 = vsub.f32 %v3828_v59, %v1576_v39 }
 0x3ea   : > { %v1467_v61 = vsub.f32 1.0, %v1466_v60 }
 0x3eb   : > { %v1582_v46 = vmul.f32 1.442695, %v1580_v40 }
 0x3ec   : > { %v1468_v63 = vmul.f32 %v2852_v58, %v1467_v61 }
 0x3ee   : > { %v1469_v3 = vadd.f32 %v2852_v58, %v1468_v63 }
 0x3f0   : > { %v1473_v5 = vsel %vm1472_vm6, %v2852_v58, %v1469_v3 }
 0x3f1   : > { %v1478_v6 = vsel %vm1475_vm7, %v1477_v45, %v1473_v5  ;;  %v1830_v15 = vpop.xlane.xlu1 %1829 }
 0x3f2   : > { %v1479_v10 = vmul.f32 %v3818_v55, %v1478_v6  ;;  %v1834_v48 = vsub.f32 %v3834_v4, %v1830_v15 }
 0x3f4   : > { %2596 = vst.msk [vmem:[%s3731_s25 + $0x40] sm:$0xff] %vm902_vm0, %v1479_v10  ;;  %v1836_v49 = vmul.f32 1.442695, %v1834_v48 }
 0x3f9   : > { %2778 = vrot.lane.b32.xlu0 %v3776_v28, %s3279_s18  ;;  %v3889_v22 = vpop.xlane.xlu1 %1832 }
 0x3fa   : > { %v1835_v54 = vsub.f32 %v3840_v8, %v3889_v22 }
 0x3fc   : > { %v1838_v57 = vmul.f32 1.442695, %v1835_v54 }
 0x406   : > { %v1066_v11 = vpop.xlane.xlu0 %1065 }
 0x407   : > { %v1070_v20 = vsub.f32 %v3846_v12, %v1066_v11 }
 0x409   : > { %v1072_v7 = vmul.f32 1.442695, %v1070_v20 }
 0x40b   : > { %2853 = vpow2.f32 %v1072_v7 }
 0x40c   : > { %2855 = vpow2.f32 %v1457_v23 }
 0x40e   : > { %v1322_v24 = vpop.xlane.xlu0 %1321 }
 0x40f   : > { %v1326_v55 = vsub.f32 %v3852_v14, %v1322_v24  ;;  %v1330_v14 = vmul.f32 1.442695, %v1327_v17 }
 0x411   : > { %v3894_v27 = vpop.eup %2853  ;;  %v1328_v12 = vmul.f32 1.442695, %v1326_v55  ;;  %v2784_v25 = vpop.permute.xlu1 %2783 }
 0x412   : > { %v2785_v30 = vunpack.i.l.bf16 %v2784_v25  ;;  %v1076_v26 = vsel %vm902_vm0, %v3894_v27, 0.0  ;;  %v2786_v32 = vunpack.i.h.bf16 %v2784_v25  ;;  %v3899_v1 = vpop.eup %2855 }
 0x413   : > { %2857 = vpow2.f32 %v1328_v12  ;;  %1077 = vadd.xlane.f32.xlu2 %v1076_v26  ;;  %v1462_v2 = vsel %vm902_vm0, %v3899_v1, 0.0 }
 0x414   : > { %1524 = vmatpush.msrb.mxu2 %v2785_v30  ;;  %2859 = vpow2.f32 %v1709_v56 }
 0x415   : > { %2861 = vpow2.f32 %v1330_v14 }
 0x416   : > { %1525 = vmatpush.msrb.mxu2 %v2786_v32  ;;  %v1579_v33 = vpop.xlane.xlu0 %1578 }
 0x417   : > { %v1581_v19 = vsub.f32 %v3858_v18, %v1579_v33  ;;  %2598 = vmatmul.msk.f32.vlgmr.msrb.gmra.mxu2 %vm902_vm0, %v1479_v10  ;;  %v1711_v18 = vmul.f32 1.442695, %v1708_v34 }
 0x419   : > { %v3903_v52 = vpop.eup %2857  ;;  %v1584_v35 = vmul.f32 1.442695, %v1581_v19 }
 0x41a   : > { %v1332_v36 = vsel %vm902_vm0, %v3903_v52, 0.0  ;;  %v3911_v37 = vpop.eup %2859 }
 0x41b   : > { %2863 = vpow2.f32 %v1584_v35  ;;  %1463 = vadd.xlane.f32.xlu2 %v1462_v2  ;;  %1333 = vadd.xlane.f32.xlu1 %v1332_v36  ;;  %v3913_v41 = vpop.eup %2861  ;;  %v1713_v16 = vsel %vm902_vm0, %v3911_v37, 0.0 }
 0x41c   : > { %2865 = vpow2.f32 %v1711_v18  ;;  %v1335_v43 = vsel %vm902_vm0, %v3913_v41, 0.0 }
 0x41d   : > { %2867 = vpow2.f32 %v1582_v46 }
 0x41e   : > { %2869 = vpow2.f32 %v1836_v49 }
 0x421   : > { %v3915_v42 = vpop.eup %2863 }
 0x422   : > { %v1589_v44 = vsel %vm902_vm0, %v3915_v42, 0.0  ;;  %v3924_v47 = vpop.eup %2865 }
 0x423   : > { %1714 = vadd.xlane.f32.xlu2 %v1713_v16  ;;  %1336 = vadd.xlane.f32.xlu1 %v1335_v43  ;;  %v1716_v59 = vsel %vm902_vm0, %v3924_v47, 0.0  ;;  %v3929_v38 = vpop.eup %2867 }
 0x424   : > { %1590 = vadd.xlane.f32.xlu0 %v1589_v44  ;;  %v1586_v50 = vsel %vm902_vm0, %v3929_v38, 0.0  ;;  %v3933_v51 = vpop.eup %2869 }
 0x425   : > { %v1840_v4 = vsel %vm902_vm0, %v3933_v51, 0.0 }
 0x42b   : > { %1717 = vadd.xlane.f32.xlu2 %v1716_v59 }
 0x433   : > { %1587 = vadd.xlane.f32.xlu2 %v1586_v50 }
 0x438   : > { %2798 = vrot.lane.b32.xlu0 %v3776_v28, %s3283_s4 }
 0x43b   : > { %1841 = vadd.xlane.f32.xlu2 %v1840_v4 }
 0x43c   : > { %2788 = vrot.lane.b32.xlu1 %v3776_v28, %s3281_s6 }
 0x453   : > { %2793 = vrot.lane.b32.xlu2 %v3776_v28, %s3282_s28 }
 0x458   : > { %v1081_v58 = vpop.xlane.xlu0 %1080 }
 0x459   : > { %2871 = vrcp.f32 %v1081_v58  ;;  %v1108_v3 = vand.u32 2147483648, %v1081_v58  ;;  %v1106_v5 = vand.u32 2147483647, %v1081_v58  ;;  %vm1102_vm9 = vweird.f32 %v1081_v58 }
 0x45a   : > { %2873 = vpow2.f32 %v1838_v57 }
 0x45b   : > { %v1109_v6 = vor.u32 1.1754944e-38, %v1108_v3  ;;  %vm1107_vm11 = vcmp.eq.f32.partialorder %v1106_v5, 8.507059e+37 }
 0x45f   : > { %v2872_v60 = vpop.eup %2871  ;;  %v1273_v61 = vpop.f32.mrf.mxu2 }
 0x460   : > { %v1098_v62 = vmul.f32 %v2872_v60, %v1081_v58  ;;  %v3945_v63 = vpop.eup %2873  ;;  %vm1103_vm8 = vweird.f32 %v2872_v60 }
 0x461   : > { %v1843_v28 = vsel %vm902_vm0, %v3945_v63, 0.0  ;;  %vm1104_vm10 = vmor %vm1102_vm9, %vm1103_vm8 }
 0x462   : > { %v1099_v0 = vsub.f32 1.0, %v1098_v62 }
 0x464   : > { %v1100_v45 = vmul.f32 %v2872_v60, %v1099_v0 }
 0x466   : > { %1844 = vadd.xlane.f32.xlu1 %v1843_v28  ;;  %v1101_v8 = vadd.f32 %v2872_v60, %v1100_v45 }
 0x467   : > { %v1276_v10 = vpop.f32.mrf.mxu2 }
 0x468   : > { %v1105_v13 = vsel %vm1104_vm10, %v2872_v60, %v1101_v8  ;;  %v2802_v15 = vpack.i.bf16 %v1276_v10, %v1273_v61 }
 0x469   : > { %v1110_v11 = vsel %vm1107_vm11, %v1109_v6, %v1105_v13 }
 0x46a   : > { %v3950_v20 = vmul.f32 %v3873_v53, %v1110_v11  ;;  %2803 = vrot.lane.b32.xlu0 %v2802_v15, %s3282_s28 }
 0x46b   : > { %v2779_v21 = vpop.permute.xlu0 %2778 }
 0x46c   : > { %v2780_v22 = vunpack.i.l.bf16 %v2779_v21  ;;  %2573 = vst.msk [vmem:[%s3731_s25 + $0x18] sm:$0xff] %vm902_vm0, %v3950_v20  ;;  %v2781_v7 = vunpack.i.h.bf16 %v2779_v21 }
 0x46e   : > { %1397 = vmatpush.msra.mxu0 %v2780_v22 }
 0x470   : > { %1398 = vmatpush.msra.mxu0 %v2781_v7 }
 0x486   : > { %v1078_v23 = vpop.xlane.xlu2 %1077 }
 0x487   : > { %2875 = vrcp.f32 %v1078_v23  ;;  %v1093_v25 = vand.u32 2147483648, %v1078_v23  ;;  %vm1087_vm13 = vweird.f32 %v1078_v23  ;;  %v1091_v32 = vand.u32 2147483647, %v1078_v23 }
 0x489   : > { %v1094_v35 = vor.u32 1.1754944e-38, %v1093_v25  ;;  %vm1092_vm15 = vcmp.eq.f32.partialorder %v1091_v32, 8.507059e+37 }
 0x48d   : > { %v2876_v24 = vpop.eup %2875 }
 0x48e   : > { %v1083_v55 = vmul.f32 %v2876_v24, %v1078_v23  ;;  %v1464_v9 = vpop.xlane.xlu2 %1463  ;;  %v1334_v17 = vpop.xlane.xlu1 %1333  ;;  %vm1088_vm12 = vweird.f32 %v2876_v24 }
 0x48f   : > { %2877 = vrcp.f32 %v1464_v9  ;;  %vm3960_vm14 = vmor %vm1087_vm13, %vm1088_vm12  ;;  %v1491_v39 = vand.u32 2147483648, %v1464_v9  ;;  %v1347_v43 = vand.u32 2147483647, %v1334_v17  ;;  %v1349_v44 = vand.u32 2147483648, %v1334_v17 }
 0x490   : > { %v1084_v12 = vsub.f32 1.0, %v1083_v55  ;;  %2879 = vrcp.f32 %v1334_v17  ;;  %v1489_v48 = vand.u32 2147483647, %v1464_v9  ;;  %vm1485_vm3 = vweird.f32 %v1464_v9 }
 0x491   : > { %vm1343_vm4 = vweird.f32 %v1334_v17  ;;  %v1492_v57 = vor.u32 1.1754944e-38, %v1491_v39  ;;  %vm3972_vm5 = vcmp.eq.f32.partialorder %v1347_v43, 8.507059e+37  ;;  %v1350_v61 = vor.u32 1.1754944e-38, %v1349_v44 }
 0x492   : > { %v1085_v53 = vmul.f32 %v2876_v24, %v1084_v12  ;;  %vm1490_vm9 = vcmp.eq.f32.partialorder %v1489_v48, 8.507059e+37 }
 0x494   : > { %v1086_v30 = vadd.f32 %v2876_v24, %v1085_v53 }
 0x495   : > { %v2878_v26 = vpop.eup %2877 }
 0x496   : > { %v2880_v56 = vpop.eup %2879  ;;  %v1481_v14 = vmul.f32 %v2878_v26, %v1464_v9  ;;  %v3956_v33 = vpop.xlane.xlu2 %1714  ;;  %v1090_v40 = vsel %vm3960_vm14, %v2876_v24, %v1086_v30  ;;  %vm1486_vm1 = vweird.f32 %v2878_v26 }
 0x497   : > { %v3958_v19 = vpop.xlane.xlu1 %1336  ;;  %v1339_v2 = vmul.f32 %v2880_v56, %v1334_v17  ;;  %2881 = vrcp.f32 %v3956_v33  ;;  %v3965_v36 = vpop.xlane.xlu0 %1590  ;;  %vm1344_vm2 = vweird.f32 %v2880_v56  ;;  %v1095_v49 = vsel %vm1092_vm15, %v1094_v35, %v1090_v40  ;;  %vm3976_vm6 = vmor %vm1485_vm3, %vm1486_vm1 }
 0x498   : > { %v1482_v18 = vsub.f32 1.0, %v1481_v14  ;;  %2883 = vrcp.f32 %v3958_v19  ;;  %v1096_v50 = vmul.f32 %v3894_v27, %v1095_v49  ;;  %vm1345_vm7 = vmor %vm1343_vm4, %vm1344_vm2  ;;  %vm1724_vm8 = vweird.f32 %v3956_v33 }
 0x499   : > { %v1340_v16 = vsub.f32 1.0, %v1339_v2  ;;  %2885 = vrcp.f32 %v3965_v36  ;;  %v1728_v8 = vand.u32 2147483647, %v3956_v33  ;;  %v1730_v15 = vand.u32 2147483648, %v3956_v33 }
 0x49a   : > { %v1483_v46 = vmul.f32 %v2878_v26, %v1482_v18  ;;  %2572 = vst.msk [vmem:[%s3731_s25 + $0x10] sm:$0xff] %vm902_vm0, %v1096_v50  ;;  %2574 = vmatmul.msk.f32.vlgmr.msrb.gmra.mxu0 %vm902_vm0, %v1096_v50  ;;  %vm1358_vm10 = vweird.f32 %v3958_v19  ;;  %v1364_v12 = vand.u32 2147483648, %v3958_v19  ;;  %v1618_v53 = vand.u32 2147483648, %v3965_v36 }
 0x49b   : > { %v1341_v59 = vmul.f32 %v2880_v56, %v1340_v16  ;;  %vm3999_vm12 = vcmp.eq.f32.partialorder %v1728_v8, 8.507059e+37  ;;  %v1616_v32 = vand.u32 2147483647, %v3965_v36  ;;  %vm1612_vm1 = vweird.f32 %v3965_v36 }
 0x49c   : > { %v1484_v4 = vadd.f32 %v2878_v26, %v1483_v46  ;;  %v1619_v39 = vor.u32 1.1754944e-38, %v1618_v53 }
 0x49d   : > { %v2882_v54 = vpop.eup %2881  ;;  %v1342_v58 = vadd.f32 %v2880_v56, %v1341_v59 }
 0x49e   : > { %v2884_v0 = vpop.eup %2883  ;;  %v1720_v3 = vmul.f32 %v2882_v54, %v3956_v33  ;;  %v3985_v27 = vpop.xlane.xlu2 %1717  ;;  %v1488_v45 = vsel %vm3976_vm6, %v2878_v26, %v1484_v4  ;;  %vm1725_vm11 = vweird.f32 %v2882_v54  ;;  %v1731_v26 = vor.u32 1.1754944e-38, %v1730_v15 }
 0x49f   : > { %v2886_v5 = vpop.eup %2885  ;;  %v1346_v28 = vsel %vm1345_vm7, %v2880_v56, %v1342_v58  ;;  %v1354_v6 = vmul.f32 %v2884_v0, %v3958_v19  ;;  %2887 = vrcp.f32 %v3985_v27  ;;  %v1493_v22 = vsel %vm1490_vm9, %v1492_v57, %v1488_v45  ;;  %vm1726_vm14 = vmor %vm1724_vm8, %vm1725_vm11 }
 0x4a0   : > { %v1351_v10 = vsel %vm3972_vm5, %v1350_v61, %v1346_v28  ;;  %v1721_v13 = vsub.f32 1.0, %v1720_v3  ;;  %v1608_v11 = vmul.f32 %v2886_v5, %v3965_v36  ;;  %v1494_v55 = vmul.f32 %v3899_v1, %v1493_v22 }
 0x4a1   : > { %v1355_v21 = vsub.f32 1.0, %v1354_v6  ;;  %v1352_v7 = vmul.f32 %v3903_v52, %v1351_v10  ;;  %vm1359_vm13 = vweird.f32 %v2884_v0  ;;  %v1362_v1 = vand.u32 2147483647, %v3958_v19 }
 0x4a2   : > { %v1722_v23 = vmul.f32 %v2882_v54, %v1721_v13  ;;  %v1609_v24 = vsub.f32 1.0, %v1608_v11  ;;  %2597 = vst.msk [vmem:[%s3731_s25 + $0x48] sm:$0xff] %vm902_vm0, %v1494_v55  ;;  %2599 = vmatmul.msk.f32.gmra.mxu2 %vm902_vm0, %v1494_v55  ;;  %vm1613_vm15 = vweird.f32 %v2886_v5  ;;  %2575 = vmatmul.msk.f32.gmra.mxu0 %vm902_vm0, %v3950_v20  ;;  %v1365_v33 = vor.u32 1.1754944e-38, %v1364_v12  ;;  %vm1360_vm2 = vmor %vm1358_vm10, %vm1359_vm13 }
 0x4a3   : > { %v1356_v17 = vmul.f32 %v2884_v0, %v1355_v21  ;;  %2588 = vst.msk [vmem:[%s3731_s25 + $0x30] sm:$0xff] %vm902_vm0, %v1352_v7  ;;  %vm1363_vm3 = vcmp.eq.f32.partialorder %v1362_v1, 8.507059e+37  ;;  %vm1614_vm4 = vmor %vm1612_vm1, %vm1613_vm15  ;;  %v1745_v20 = vand.u32 2147483648, %v3985_v27  ;;  %vm1617_vm5 = vcmp.eq.f32.partialorder %v1616_v32, 8.507059e+37 }
 0x4a4   : > { %v1723_v25 = vadd.f32 %v2882_v54, %v1722_v23  ;;  %v1610_v30 = vmul.f32 %v2886_v5, %v1609_v24  ;;  %vm1739_vm7 = vweird.f32 %v3985_v27 }
 0x4a5   : > { %v2888_v52 = vpop.eup %2887  ;;  %v1357_v56 = vadd.f32 %v2884_v0, %v1356_v17 }
 0x4a6   : > { %v1727_v14 = vsel %vm1726_vm14, %v2882_v54, %v1723_v25  ;;  %v1735_v34 = vmul.f32 %v2888_v52, %v3985_v27  ;;  %v1588_v35 = vpop.xlane.xlu2 %1587  ;;  %v1611_v2 = vadd.f32 %v2886_v5, %v1610_v30  ;;  %vm1740_vm6 = vweird.f32 %v2888_v52 }
 0x4a7   : > { %v1732_v18 = vsel %vm3999_vm12, %v1731_v26, %v1727_v14  ;;  %2889 = vrcp.f32 %v1588_v35  ;;  %v1361_v36 = vsel %vm1360_vm2, %v2884_v0, %v1357_v56  ;;  %vm1741_vm8 = vmor %vm1739_vm7, %vm1740_vm6  ;;  %v1603_v0 = vand.u32 2147483648, %v1588_v35 }
 0x4a8   : > { %v1736_v40 = vsub.f32 1.0, %v1735_v34  ;;  %v4025_v16 = vmul.f32 %v3911_v37, %v1732_v18  ;;  %v1366_v43 = vsel %vm1363_vm3, %v1365_v33, %v1361_v36  ;;  %v1615_v44 = vsel %vm1614_vm4, %v2886_v5, %v1611_v2 }
 0x4a9   : > { %v1367_v48 = vmul.f32 %v3913_v41, %v1366_v43  ;;  %v1620_v19 = vsel %vm1617_vm5, %v1619_v39, %v1615_v44  ;;  %v1743_v37 = vand.u32 2147483647, %v3985_v27  ;;  %v1746_v41 = vor.u32 1.1754944e-38, %v1745_v20 }
 0x4aa   : > { %v1737_v46 = vmul.f32 %v2888_v52, %v1736_v40  ;;  %2612 = vst.msk [vmem:[%s3731_s25 + $0x60] sm:$0xff] %vm902_vm0, %v4025_v16  ;;  %v4034_v59 = vmul.f32 %v3915_v42, %v1620_v19  ;;  %2590 = vmatmul.msk.f32.vlgmr.msra.gmra.mxu0 %vm902_vm0, %v1352_v7  ;;  %v2799_v60 = vpop.permute.xlu0 %2798  ;;  %v1601_v45 = vand.u32 2147483647, %v1588_v35  ;;  %vm1597_vm11 = vweird.f32 %v1588_v35  ;;  %v1527_v40 = vpop.f32.mrf.mxu2 }
 0x4ab   : > { %2589 = vst.msk [vmem:[%s3731_s25 + $0x38] sm:$0xff] %vm902_vm0, %v1367_v48  ;;  %vm1744_vm9 = vcmp.eq.f32.partialorder %v1743_v37, 8.507059e+37  ;;  %v2800_v28 = vunpack.i.l.bf16 %v2799_v60  ;;  %v1604_v10 = vor.u32 1.1754944e-38, %v1603_v0  ;;  %v2801_v13 = vunpack.i.h.bf16 %v2799_v60  ;;  %v1999_v60 = vld [vmem:[#allocation11 + $0x48] sm:$0xff]  ;;  %v1996_v0 = vld [vmem:[#allocation11 + $0x30] sm:$0xff] }
 0x4ac   : > { %v1738_v49 = vadd.f32 %v2888_v52, %v1737_v46  ;;  %2605 = vst.msk [vmem:[%s3731_s25 + $0x58] sm:$0xff] %vm902_vm0, %v4034_v59  ;;  %vm1602_vm13 = vcmp.eq.f32.partialorder %v1601_v45, 8.507059e+37  ;;  %v1993_v45 = vld [vmem:[#allocation11 + $0x18] sm:$0xff]  ;;  %vm1972_vm7 = vcmask 261120  }
 0x4ad   : > { %v2890_v50 = vpop.eup %2889 }
 0x4ae   : > { %v1593_v4 = vmul.f32 %v2890_v50, %v1588_v35  ;;  %v1842_v54 = vpop.xlane.xlu2 %1841  ;;  %v2789_v57 = vpop.permute.xlu1 %2788  ;;  %v1742_v42 = vsel %vm1741_vm8, %v2888_v52, %v1738_v49  ;;  %vm1598_vm10 = vweird.f32 %v2890_v50  ;;  %vm1975_vm8 = vcmask 392192  }
 0x4af   : > { %2891 = vrcp.f32 %v1842_v54  ;;  %v2790_v61 = vunpack.i.l.bf16 %v2789_v57  ;;  %v1747_v62 = vsel %vm1744_vm9, %v1746_v41, %v1742_v42  ;;  %v2791_v5 = vunpack.i.h.bf16 %v2789_v57  ;;  %vm1599_vm12 = vmor %vm1597_vm11, %vm1598_vm10  ;;  %v2005_v41 = vld [vmem:[#allocation11 + $0x78] sm:$0xff]  ;;  %v2002_v57 = vld [vmem:[#allocation11 + $0x60] sm:$0xff] }
 0x4b0   : > { %v1594_v58 = vsub.f32 1.0, %v1593_v4  ;;  %v1748_v3 = vmul.f32 %v3924_v47, %v1747_v62  ;;  %v1857_v24 = vand.u32 2147483648, %v1842_v54  ;;  %v1855_v17 = vand.u32 2147483647, %v1842_v54  ;;  %v2004_v4 = vld [vmem:[#allocation11 + $0x70] sm:$0xff]  ;;  %2010 = vmatpush.msrb.mxu1 %v2005_v41  ;;  %v2001_v42 = vld [vmem:[#allocation11 + $0x58] sm:$0xff] }
 0x4b1   : > { %1651 = vmatpush.msrb.mxu0 %v2790_v61  ;;  %vm1851_vm15 = vweird.f32 %v1842_v54  ;;  %v1998_v61 = vld [vmem:[#allocation11 + $0x40] sm:$0xff]  ;;  %v1997_v62 = vld [vmem:[#allocation11 + $0x38] sm:$0xff]  ;;  %vm1978_vm9 = vcmask 523264   ;;  %vm1981_vm10 = vcmask 654336   ;;  %vm1984_vm11 = vcmask 785408  }
 0x4b2   : > { %v1595_v27 = vmul.f32 %v2890_v50, %v1594_v58  ;;  %2613 = vst.msk [vmem:[%s3731_s25 + $0x68] sm:$0xff] %vm902_vm0, %v1748_v3  ;;  %2591 = vmatmul.msk.f32.gmra.mxu0 %vm902_vm0, %v1367_v48  ;;  %v1858_v53 = vor.u32 1.1754944e-38, %v1857_v24  ;;  %vm1856_vm2 = vcmp.eq.f32.partialorder %v1855_v17, 8.507059e+37  ;;  %2011 = vmatpush.msrb.mxu1 %v2004_v4  ;;  %v2000_v58 = vld [vmem:[#allocation11 + $0x50] sm:$0xff] }
 0x4b3   : > { %1652 = vmatpush.msrb.mxu0 %v2791_v5  ;;  %v1992_v5 = vld [vmem:[#allocation11 + $0x10] sm:$0xff] }
 0x4b4   : > { %v1596_v8 = vadd.f32 %v2890_v50, %v1595_v27  ;;  %v1994_v27 = vld [vmem:[#allocation11 + $0x20] sm:$0xff] }
 0x4b5   : > { %v2892_v6 = vpop.eup %2891  ;;  %1905 = vmatpush.msra.mxu0 %v2800_v28 }
 0x4b6   : > { %v1600_v15 = vsel %vm1599_vm12, %v2890_v50, %v1596_v8  ;;  %v1847_v47 = vmul.f32 %v2892_v6, %v1842_v54  ;;  %v2794_v11 = vpop.permute.xlu2 %2793  ;;  %vm1852_vm14 = vweird.f32 %v2892_v6  ;;  %v2003_v54 = vld [vmem:[#allocation11 + $0x68] sm:$0xff]  ;;  %vm1987_vm12 = vcmask 916480  }
 0x4b7   : > { %v1605_v21 = vsel %vm1602_vm13, %v1604_v10, %v1600_v15  ;;  %v2795_v22 = vunpack.i.l.bf16 %v2794_v11  ;;  %1906 = vmatpush.msra.mxu0 %v2801_v13  ;;  %v2796_v55 = vunpack.i.h.bf16 %v2794_v11  ;;  %vm1853_vm1 = vmor %vm1851_vm15, %vm1852_vm14  ;;  %2012 = vmatpush.msrb.mxu1 %v2003_v54  ;;  %v1991_v8 = vld [vmem:[#allocation11 + $0x8] sm:$0xff] }
 0x4b8   : > { %v1848_v7 = vsub.f32 1.0, %v1847_v47  ;;  %v1606_v23 = vmul.f32 %v3929_v38, %v1605_v21 }
 0x4b9   : > { %1778 = vmatpush.msra.mxu2 %v2795_v22  ;;  %2013 = vmatpush.msrb.mxu1 %v2002_v57 }
 0x4ba   : > { %v1849_v9 = vmul.f32 %v2892_v6, %v1848_v7  ;;  %2604 = vst.msk [vmem:[%s3731_s25 + $0x50] sm:$0xff] %vm902_vm0, %v1606_v23  ;;  %2606 = vmatmul.msk.f32.vlgmr.msrb.gmra.mxu0 %vm902_vm0, %v1606_v23 }
 0x4bb   : > { %1779 = vmatpush.msra.mxu2 %v2796_v55  ;;  %2014 = vmatpush.msrb.mxu1 %v2001_v42 }
 0x4bc   : > { %v1850_v12 = vadd.f32 %v2892_v6, %v1849_v9  ;;  %2614 = vmatmul.msk.f32.vlgmr.msra.gmra.mxu2 %vm902_vm0, %v4025_v16 }
 0x4bd   : > { %2015 = vmatpush.msrb.mxu1 %v2000_v58 }
 0x4be   : > { %v1854_v25 = vsel %vm1853_vm1, %v2892_v6, %v1850_v12  ;;  %v1990_v6 = vld [vmem:[#allocation11] sm:$0xff] }
 0x4bf   : > { %v1859_v38 = vsel %vm1856_vm2, %v1858_v53, %v1854_v25  ;;  %2016 = vmatpush.msrb.mxu1 %v1999_v60 }
 0x4c0   : > { %v1860_v30 = vmul.f32 %v3933_v51, %v1859_v38 }
 0x4c1   : > { %2017 = vmatpush.msrb.mxu1 %v1998_v61 }
 0x4c2   : > { %2620 = vst.msk [vmem:[%s3731_s25 + $0x70] sm:$0xff] %vm902_vm0, %v1860_v30  ;;  %2607 = vmatmul.msk.f32.gmra.mxu0 %vm902_vm0, %v4034_v59 }
 0x4c3   : > { %2018 = vmatpush.msrb.mxu1 %v1997_v62 }
 0x4c4   : > { %2615 = vmatmul.msk.f32.gmra.mxu2 %vm902_vm0, %v1748_v3  ;;  %v1995_v3 = vld [vmem:[#allocation11 + $0x28] sm:$0xff] }
 0x4c5   : > { %2019 = vmatpush.msrb.mxu1 %v1996_v0 }
 0x4c7   : > { %2020 = vmatpush.msrb.mxu1 %v1995_v3 }
 0x4c9   : > { %2021 = vmatpush.msrb.mxu1 %v1994_v27 }
 0x4ca   : > { %2622 = vmatmul.msk.f32.vlgmr.msra.gmra.mxu0 %vm902_vm0, %v1860_v30 }
 0x4cb   : > { %2022 = vmatpush.msrb.mxu1 %v1993_v45  ;;  %v2120_v45 = vld [vmem:[#allocation13 + $0xd0] sm:$0xff] }
 0x4cd   : > { %2023 = vmatpush.msrb.mxu1 %v1992_v5  ;;  %v2121_v5 = vld [vmem:[#allocation13 + $0xd8] sm:$0xff] }
 0x4cf   : > { %2024 = vmatpush.msrb.mxu1 %v1991_v8  ;;  %v2119_v8 = vld [vmem:[#allocation13 + $0xc8] sm:$0xff] }
 0x4d1   : > { %2025 = vmatpush.msrb.mxu1 %v1990_v6  ;;  %v2116_v6 = vld [vmem:[#allocation13 + $0xb0] sm:$0xff] }
 0x4d9   : > { %v1845_v1 = vpop.xlane.xlu1 %1844 }
 0x4da   : > { %2893 = vrcp.f32 %v1845_v1  ;;  %v1872_v32 = vand.u32 2147483648, %v1845_v1  ;;  %v1870_v34 = vand.u32 2147483647, %v1845_v1  ;;  %vm1866_vm4 = vweird.f32 %v1845_v1 }
 0x4dc   : > { %v1873_v35 = vor.u32 1.1754944e-38, %v1872_v32  ;;  %vm1871_vm6 = vcmp.eq.f32.partialorder %v1870_v34, 8.507059e+37  ;;  %v2804_v15 = vpop.permute.xlu0 %2803 }
 0x4dd   : > { %v2805_v22 = vunpack.i.l.bf16 %v2804_v15 }
 0x4e0   : > { %v2894_v52 = vpop.eup %2893 }
 0x4e1   : > { %v1862_v26 = vmul.f32 %v2894_v52, %v1845_v1  ;;  %vm1867_vm3 = vweird.f32 %v2894_v52 }
 0x4e2   : > { %vm1868_vm5 = vmor %vm1866_vm4, %vm1867_vm3 }
 0x4e3   : > { %v1863_v56 = vsub.f32 1.0, %v1862_v26 }
 0x4e5   : > { %v1864_v14 = vmul.f32 %v2894_v52, %v1863_v56 }
 0x4e7   : > { %v1865_v51 = vadd.f32 %v2894_v52, %v1864_v14 }
 0x4e9   : > { %v1869_v2 = vsel %vm1868_vm5, %v2894_v52, %v1865_v51  ;;  %v2806_v52 = vunpack.i.h.bf16 %v2804_v15  ;;  %v2115_v15 = vld [vmem:[#allocation13 + $0xa8] sm:$0xff] }
 0x4ea   : > { %v1874_v18 = vsel %vm1871_vm6, %v1873_v35, %v1869_v2 }
 0x4eb   : > { %v1875_v33 = vmul.f32 %v3945_v63, %v1874_v18 }
 0x4ed   : > { %2621 = vst.msk [vmem:[%s3731_s25 + $0x78] sm:$0xff] %vm902_vm0, %v1875_v33  ;;  %2623 = vmatmul.msk.f32.gmra.mxu0 %vm902_vm0, %v1875_v33  ;;  %v2825_v33 = vld [vmem:[%s4204_s9] ss:$0 sm:$0xff] }
 0x517   : > { %v1146_v39 = vpop.f32.mrf.mxu0 }
 0x51f   : > { %v1149_v36 = vpop.f32.mrf.mxu0 }
 0x520   : > { %v2812_v19 = vpack.i.bf16 %v1149_v36, %v1146_v39  ;;  %v2905_v36 = vld [vmem:[%s3564_s8] sm:$0xff] }
 0x525   : > { %v1530_v16 = vpop.f32.mrf.mxu2 }
 0x526   : > { %v2807_v20 = vpack.i.bf16 %v1530_v16, %v1527_v40 }
 0x527   : > { %v1400_v43 = vpop.f32.mrf.mxu0 }
 0x528   : > { %2808 = vrot.lane.b32.xlu1 %v2807_v20, %s3280_s2 }
 0x52f   : > { %v1403_v44 = vpop.f32.mrf.mxu0 }
 0x530   : > { %v2817_v37 = vpack.i.bf16 %v1403_v44, %v1400_v43  ;;  %v2906_v44 = vld [vmem:[%s3564_s8 + $0x8] sm:$0xff] }
 0x537   : > { %v1654_v46 = vpop.f32.mrf.mxu0 }
 0x538   : > { %1948 = vrot.lane.b32.xlu0 %v1654_v46, %s3279_s18 }
 0x53f   : > { %v1781_v48 = vpop.f32.mrf.mxu2  ;;  %v1657_v63 = vpop.f32.mrf.mxu0 }
 0x540   : > { %1956 = vrot.lane.b32.xlu2 %v1781_v48, %s3277_s20  ;;  %v3285_v48 = vmov 128.0  }
 0x541   : > { %2895 = vrcp.f32 %v3285_v48  ;;  %v2209_v48 = vld [vmem:[#allocation14 + $0xd8] sm:$0xff] }
 0x547   : > { %v1908_v59 = vpop.f32.mrf.mxu0  ;;  %v1784_v49 = vpop.f32.mrf.mxu2 }
 0x548   : > { %2813 = vrot.lane.b32.xlu2 %v2812_v19, %s3283_s4  ;;  %1964 = vrot.lane.b32.xlu0 %v1908_v59, %s3278_s26  ;;  %v2124_v59 = vld [vmem:[#allocation13 + $0xf0] sm:$0xff]  ;;  %s4277_s4 = sld [smem:[#allocation45_spill]] }
 0x549   : > { %2132 = vmatpush.msrb.mxu2 %v2124_v59  ;;  %v2208_v59 = vld [vmem:[#allocation14 + $0xd0] sm:$0xff] }
 0x54e   : > { %s3167_s22 = scalar_lea.hbm %s4277_s4, 256 }
 0x550   : > { %2818 = vrot.lane.b32.xlu2 %v2817_v37, %s3281_s6  ;;  %1958 = vrot.lane.b32.xlu0 %v1784_v49, %s3277_s20  ;;  %v2125_v37 = vld [vmem:[#allocation13 + $0xf8] sm:$0xff]  ;;  %v2122_v49 = vld [vmem:[#allocation13 + $0xe0] sm:$0xff]  ;;  %s2634_s6 = sshll.u32 %s3412_s24, 7 }
 0x551   : > { %2155 = vmatpush.msra.mxu3 %v2125_v37  ;;  %2133 = vmatpush.msrb.mxu2 %v2122_v49  ;;  %v2191_v49 = vld [vmem:[#allocation14 + $0x48] sm:$0xff]  ;;  %s2354_s12 = scalar_lea.hbm %s4277_s4, %s2634_s6 }
 0x552   : > { %s2357_s17 = sshll.u32 %s2354_s12, 4  ;;  %s2358_s17 = int_to_ptr.hbm [resolvable:$true] %s2357_s17 }
 0x553   : > { %2134 = vmatpush.msrb.mxu2 %v2120_v45  ;;  %s3161_s8 = sshra.s32 %s2358_s17, 4  ;;  %s3162_s8 = int_to_ptr.hbm [resolvable:$true] %s3161_s8 }
 0x554   : > { %s3163_s29 = scalar_lea.hbm %s3162_s8, 128  ;;  %p3168_p7 = scmp.lt.s32.totalorder %s3162_s8, %s4277_s4 }
 0x555   : > { %p3164_p1 = scmp.ne.s32.totalorder %s3162_s8, %s3163_s29  ;;  %p3169_p9 = scmp.lt.s32.totalorder %s3167_s22, %s3163_s29 }
 0x557   : > { %p3165_p3 = pnand %p3164_p1, %p3502_p4  ;;  %p3170_p5 = por %p3169_p9, %p3168_p7 }
 0x558   : > { %1950 = vrot.lane.b32.xlu2 %v1657_v63, %s3279_s18  ;;  %v2896_v63 = vpop.eup %2895 }
 0x559   : > { %v2042_v19 = vmul.f32 128.0, %v2896_v63  ;;  %p3166_p12 = pneg %p3165_p3 }
 0x55b   : > { %v2043_v41 = vsub.f32 1.0, %v2042_v19  ;;  %v2192_v19 = vld [vmem:[#allocation14 + $0x50] sm:$0xff]  ;;  %p3171_p8 = pnand %p3170_p5, %p3166_p12 }
 0x55d   : > { %v2044_v4 = vmul.f32 %v2896_v63, %v2043_v41 }
 0x55f   : > { %v2045_v54 = vadd.f32 %v2896_v63, %v2044_v4  ;;  %v2190_v4 = vld [vmem:[#allocation14 + $0x40] sm:$0xff] }
 0x56a   : > { %v1911_v50 = vpop.f32.mrf.mxu0 }
 0x56b   : > { %1966 = vrot.lane.b32.xlu2 %v1911_v50, %s3278_s26  ;;  %v2123_v50 = vld [vmem:[#allocation13 + $0xe8] sm:$0xff] }
 0x56c   : > { %2156 = vmatpush.msra.mxu3 %v2123_v50  ;;  %v2207_v50 = vld [vmem:[#allocation14 + $0xc8] sm:$0xff] }
 0x56e   : > { %2157 = vmatpush.msra.mxu3 %v2121_v5  ;;  %v2188_v5 = vld [vmem:[#allocation14 + $0x30] sm:$0xff] }
 0x570   : > { %2158 = vmatpush.msra.mxu3 %v2119_v8 }
 0x59a   : > { %v1957_v28 = vpop.permute.xlu2 %1956  ;;  %v2809_v7 = vpop.permute.xlu1 %2808 }
 0x59b   : > { %v2810_v55 = vunpack.i.l.bf16 %v2809_v7  ;;  %v2811_v14 = vunpack.i.h.bf16 %v2809_v7  ;;  %v2108_v7 = vld [vmem:[#allocation13 + $0x70] sm:$0xff] }
 0x5a2   : > { %v2814_v10 = vpop.permute.xlu2 %2813 }
 0x5a3   : > { %v2815_v13 = vunpack.i.l.bf16 %v2814_v10  ;;  %v2816_v12 = vunpack.i.h.bf16 %v2814_v10  ;;  %v2117_v10 = vld [vmem:[#allocation13 + $0xb8] sm:$0xff] }
 0x5a4   : > { %2159 = vmatpush.msra.mxu3 %v2117_v10  ;;  %v2827_v10 = vld [vmem:[%s4206_s11] ss:$0 sm:$0xff] }
 0x5a5   : > { %v1970_v11 = vsel %vm902_vm0, %v3781_v29, %v2815_v13  ;;  %v1971_v25 = vsel %vm902_vm0, %v3784_v31, %v2816_v12  ;;  %vm2046_vm0 = vweird.f32 %v2896_v63  ;;  %v2114_v13 = vld [vmem:[#allocation13 + $0xa0] sm:$0xff] }
 0x5a6   : > { %v1973_v23 = vsel %vm1972_vm7, %v1970_v11, %v2805_v22  ;;  %v1974_v56 = vsel %vm1972_vm7, %v1971_v25, %v2806_v52  ;;  %v4095_v57 = vsel %vm2046_vm0, %v2896_v63, %v2045_v54  ;;  %2160 = vmatpush.msra.mxu3 %v2115_v15  ;;  %v2113_v11 = vld [vmem:[#allocation13 + $0x98] sm:$0xff]  ;;  %v2111_v22 = vld [vmem:[#allocation13 + $0x88] sm:$0xff]  ;;  %v2102_v12 = vld [vmem:[#allocation13 + $0x40] sm:$0xff] }
 0x5a7   : > { %v2101_v25 = vld [vmem:[#allocation13 + $0x38] sm:$0xff]  ;;  %v2206_v54 = vld [vmem:[#allocation14 + $0xc0] sm:$0xff]  ;;  %v2203_v15 = vld [vmem:[#allocation14 + $0xa8] sm:$0xff] }
 0x5a8   : > { %2161 = vmatpush.msra.mxu3 %v2113_v11  ;;  %v2097_v52 = vld [vmem:[#allocation13 + $0x18] sm:$0xff] }
 0x5aa   : > { %v2819_v47 = vpop.permute.xlu2 %2818  ;;  %v1949_v9 = vpop.permute.xlu0 %1948  ;;  %2162 = vmatpush.msra.mxu3 %v2111_v22 }
 0x5ab   : > { %v2820_v21 = vunpack.i.l.bf16 %v2819_v47  ;;  %v2821_v38 = vunpack.i.h.bf16 %v2819_v47  ;;  %v2112_v47 = vld [vmem:[#allocation13 + $0x90] sm:$0xff] }
 0x5ad   : > { %v1976_v24 = vsel %vm1975_vm8, %v1973_v23, %v2820_v21  ;;  %v1977_v32 = vsel %vm1975_vm8, %v1974_v56, %v2821_v38  ;;  %v2110_v21 = vld [vmem:[#allocation13 + $0x80] sm:$0xff]  ;;  %v2109_v23 = vld [vmem:[#allocation13 + $0x78] sm:$0xff] }
 0x5ae   : > { %v1979_v17 = vsel %vm1978_vm9, %v1976_v24, %v2810_v55  ;;  %v1980_v34 = vsel %vm1978_vm9, %v1977_v32, %v2811_v14  ;;  %2163 = vmatpush.msra.mxu3 %v2109_v23  ;;  %v2106_v24 = vld [vmem:[#allocation13 + $0x60] sm:$0xff]  ;;  %v2107_v55 = vld [vmem:[#allocation13 + $0x68] sm:$0xff] }
 0x5af   : > { %v1982_v53 = vsel %vm1981_vm10, %v1979_v17, %v1949_v9  ;;  %v2104_v9 = vld [vmem:[#allocation13 + $0x50] sm:$0xff]  ;;  %v2105_v17 = vld [vmem:[#allocation13 + $0x58] sm:$0xff]  ;;  %v2098_v38 = vld [vmem:[#allocation13 + $0x20] sm:$0xff] }
 0x5b0   : > { %v1985_v30 = vsel %vm1984_vm11, %v1982_v53, %v1957_v28  ;;  %v2118_v28 = vld [vmem:[#allocation13 + $0xc0] sm:$0xff]  ;;  %2164 = vmatpush.msra.mxu3 %v2107_v55  ;;  %v2103_v53 = vld [vmem:[#allocation13 + $0x48] sm:$0xff]  ;;  %v2201_v55 = vld [vmem:[#allocation14 + $0x98] sm:$0xff] }
 0x5b1   : > { %2135 = vmatpush.msrb.mxu2 %v2118_v28  ;;  %v2095_v32 = vld [vmem:[#allocation13 + $0x8] sm:$0xff]  ;;  %v2204_v28 = vld [vmem:[#allocation14 + $0xb0] sm:$0xff] }
 0x5b2   : > { %v1951_v29 = vpop.permute.xlu2 %1950  ;;  %2165 = vmatpush.msra.mxu3 %v2105_v17 }
 0x5b3   : > { %v1983_v31 = vsel %vm1981_vm10, %v1980_v34, %v1951_v29  ;;  %2136 = vmatpush.msrb.mxu2 %v2116_v6  ;;  %v2100_v29 = vld [vmem:[#allocation13 + $0x30] sm:$0xff] }
 0x5b4   : > { %2166 = vmatpush.msra.mxu3 %v2103_v53 }
 0x5b5   : > { %2137 = vmatpush.msrb.mxu2 %v2114_v13  ;;  %v2187_v13 = vld [vmem:[#allocation14 + $0x28] sm:$0xff] }
 0x5b6   : > { %2167 = vmatpush.msra.mxu3 %v2101_v25  ;;  %v2200_v25 = vld [vmem:[#allocation14 + $0x90] sm:$0xff] }
 0x5b7   : > { %2138 = vmatpush.msrb.mxu2 %v2112_v47 }
 0x5b9   : > { %2139 = vmatpush.msrb.mxu2 %v2110_v21 }
 0x5ba   : > { %v1965_v1 = vpop.permute.xlu0 %1964 }
 0x5bb   : > { %v1988_v26 = vsel %vm1987_vm12, %v1985_v30, %v1965_v1  ;;  %2140 = vmatpush.msrb.mxu2 %v2108_v7  ;;  %v2099_v30 = vld [vmem:[#allocation13 + $0x28] sm:$0xff]  ;;  %v2096_v1 = vld [vmem:[#allocation13 + $0x10] sm:$0xff]  ;;  %v2186_v7 = vld [vmem:[#allocation14 + $0x20] sm:$0xff] }
 0x5bc   : > { %2026 = vmatmul.f32.vlgmr.msrb.gmra.mxu1 %v1988_v26  ;;  %2168 = vmatpush.msra.mxu3 %v2099_v30  ;;  %v2094_v26 = vld [vmem:[#allocation13] sm:$0xff]  ;;  %v2199_v30 = vld [vmem:[#allocation14 + $0x88] sm:$0xff] }
 0x5bd   : > { %2141 = vmatpush.msrb.mxu2 %v2106_v24  ;;  %v2185_v24 = vld [vmem:[#allocation14 + $0x18] sm:$0xff] }
 0x5be   : > { %2169 = vmatpush.msra.mxu3 %v2097_v52  ;;  %v2198_v52 = vld [vmem:[#allocation14 + $0x80] sm:$0xff] }
 0x5bf   : > { %2142 = vmatpush.msrb.mxu2 %v2104_v9 }
 0x5c0   : > { %2170 = vmatpush.msra.mxu3 %v2095_v32 }
 0x5c1   : > { %2143 = vmatpush.msrb.mxu2 %v2102_v12 }
 0x5c2   : > { %v1959_v35 = vpop.permute.xlu0 %1958 }
 0x5c3   : > { %v1986_v2 = vsel %vm1984_vm11, %v1983_v31, %v1959_v35  ;;  %2144 = vmatpush.msrb.mxu2 %v2100_v29  ;;  %v2213_v31 = vld [vmem:[#allocation14 + $0xf8] sm:$0xff]  ;;  %v2196_v35 = vld [vmem:[#allocation14 + $0x70] sm:$0xff] }
 0x5c4   : > { %2241 = vmatpush.msra.mxu1 %v2213_v31  ;;  %v2184_v29 = vld [vmem:[#allocation14 + $0x10] sm:$0xff] }
 0x5c5   : > { %v1967_v51 = vpop.permute.xlu2 %1966  ;;  %2145 = vmatpush.msrb.mxu2 %v2098_v38  ;;  %v2183_v38 = vld [vmem:[#allocation14 + $0x8] sm:$0xff] }
 0x5c6   : > { %v1989_v18 = vsel %vm1987_vm12, %v1986_v2, %v1967_v51  ;;  %v2197_v51 = vld [vmem:[#allocation14 + $0x78] sm:$0xff]  ;;  %v2212_v2 = vld [vmem:[#allocation14 + $0xf0] sm:$0xff] }
 0x5c7   : > { %2029 = vmatmul.f32.gmra.mxu1 %v1989_v18  ;;  %2146 = vmatpush.msrb.mxu2 %v2096_v1  ;;  %v2195_v18 = vld [vmem:[#allocation14 + $0x68] sm:$0xff]  ;;  %v2182_v1 = vld [vmem:[#allocation14] sm:$0xff] }
 0x5c8   : > { %2218 = vmatpush.msrb.mxu0 %v2197_v51  ;;  %2242 = vmatpush.msra.mxu1 %v2212_v2 }
 0x5c9   : > { %2147 = vmatpush.msrb.mxu2 %v2094_v26 }
 0x5ca   : > { %2219 = vmatpush.msrb.mxu0 %v2196_v35 }
 0x5cc   : > { %2220 = vmatpush.msrb.mxu0 %v2195_v18 }
 0x639   : > { %v2027_v39 = vpop.f32.mrf.mxu1 }
 0x63a   : > { %v2028_v40 = vadd.f32 %v2825_v33, %v2027_v39 }
 0x63c   : > { %v2033_v16 = vadd.f32 %v2905_v36, %v2028_v40  ;;  %v2194_v36 = vld [vmem:[#allocation14 + $0x60] sm:$0xff] }
 0x63d   : > { %2221 = vmatpush.msrb.mxu0 %v2194_v36 }
 0x63e   : > { %2037 = vadd.xlane.f32.xlu1 %v2033_v16 }
 0x644   : > { %v2030_v20 = vpop.f32.mrf.mxu1 }
 0x645   : > { %v2031_v43 = vadd.f32 %v2825_v33, %v2030_v20  ;;  %v2211_v33 = vld [vmem:[#allocation14 + $0xe8] sm:$0xff] }
 0x646   : > { %2243 = vmatpush.msra.mxu1 %v2211_v33 }
 0x647   : > { %v2034_v46 = vadd.f32 %v2906_v44, %v2031_v43 }
 0x649   : > { %2039 = vadd.xlane.f32.xlu0 %v2034_v46 }
 0x6b1   : > { %v2038_v42 = vpop.xlane.xlu1 %2037 }
 0x6b2   : > { %v2048_v58 = vmul.f32 %v4095_v57, %v2038_v42 }
 0x6b4   : > { %v4098_v60 = vsub.f32 %v2033_v16, %v2048_v58  ;;  %v2210_v16 = vld [vmem:[#allocation14 + $0xe0] sm:$0xff] }
 0x6b5   : > { %2244 = vmatpush.msra.mxu1 %v2210_v16  ;;  %v2828_v16 = vld [vmem:[%s4210_s15] ss:$0 sm:$0xff] }
 0x6b6   : > { %v2052_v61 = vmul.f32 %v4098_v60, %v4098_v60 }
 0x6b7   : > { %2245 = vmatpush.msra.mxu1 %v2209_v48 }
 0x6b8   : > { %2054 = vadd.xlane.f32.xlu2 %v2052_v61  ;;  %v2189_v61 = vld [vmem:[#allocation14 + $0x38] sm:$0xff] }
 0x6b9   : > { %2246 = vmatpush.msra.mxu1 %v2208_v59 }
 0x6bb   : > { %2247 = vmatpush.msra.mxu1 %v2207_v50 }
 0x6bc   : > { %v2040_v62 = vpop.xlane.xlu0 %2039 }
 0x6bd   : > { %v2049_v0 = vmul.f32 %v4095_v57, %v2040_v62  ;;  %v2205_v62 = vld [vmem:[#allocation14 + $0xb8] sm:$0xff]  ;;  %2248 = vmatpush.msra.mxu1 %v2206_v54 }
 0x6bf   : > { %v4103_v3 = vsub.f32 %v2034_v46, %v2049_v0  ;;  %v2193_v46 = vld [vmem:[#allocation14 + $0x58] sm:$0xff]  ;;  %2249 = vmatpush.msra.mxu1 %v2205_v62 }
 0x6c0   : > { %2222 = vmatpush.msrb.mxu0 %v2193_v46 }
 0x6c1   : > { %v2053_v27 = vmul.f32 %v4103_v3, %v4103_v3  ;;  %2250 = vmatpush.msra.mxu1 %v2204_v28 }
 0x6c2   : > { %2223 = vmatpush.msrb.mxu0 %v2192_v19 }
 0x6c3   : > { %2056 = vadd.xlane.f32.xlu1 %v2053_v27  ;;  %v2826_v27 = vld [vmem:[%s4205_s10] ss:$0 sm:$0xff]  ;;  %2251 = vmatpush.msra.mxu1 %v2203_v15 }
 0x6c4   : > { %2224 = vmatpush.msrb.mxu0 %v2191_v49 }
 0x6c6   : > { %2225 = vmatpush.msrb.mxu0 %v2190_v4 }
 0x6c8   : > { %2226 = vmatpush.msrb.mxu0 %v2189_v61 }
 0x6ca   : > { %2227 = vmatpush.msrb.mxu0 %v2188_v5 }
 0x6cc   : > { %2228 = vmatpush.msrb.mxu0 %v2187_v13 }
 0x6ce   : > { %2229 = vmatpush.msrb.mxu0 %v2186_v7 }
 0x6d0   : > { %2230 = vmatpush.msrb.mxu0 %v2185_v24 }
 0x6d2   : > { %2231 = vmatpush.msrb.mxu0 %v2184_v29 }
 0x6d4   : > { %2232 = vmatpush.msrb.mxu0 %v2183_v38 }
 0x6d6   : > { %2233 = vmatpush.msrb.mxu0 %v2182_v1 }
 0x72b   : > { %v2055_v56 = vpop.xlane.xlu2 %2054 }
 0x72c   : > { %v2058_v14 = vmul.f32 %v2055_v56, %v4095_v57 }
 0x72e   : > { %v2060_v34 = vadd.f32 1e-05, %v2058_v14 }
 0x730   : > { %2897 = vrsqrt.f32 %v2060_v34  ;;  %vm2068_vm14 = vweird.f32 %v2060_v34 }
 0x736   : > { %v2057_v39 = vpop.xlane.xlu1 %2056  ;;  %v2898_v20 = vpop.eup %2897 }
 0x737   : > { %v2059_v40 = vmul.f32 %v2057_v39, %v4095_v57  ;;  %v2063_v43 = vmul.f32 %v2898_v20, %v2060_v34  ;;  %vm2069_vm13 = vweird.f32 %v2898_v20 }
 0x738   : > { %vm2070_vm15 = vmor %vm2068_vm14, %vm2069_vm13 }
 0x739   : > { %v2061_v44 = vadd.f32 1e-05, %v2059_v40  ;;  %v2064_v63 = vmul.f32 %v2898_v20, %v2063_v43 }
 0x73b   : > { %2899 = vrsqrt.f32 %v2061_v44  ;;  %v2065_v37 = vmul.f32 0.5, %v2064_v63  ;;  %vm2078_vm2 = vweird.f32 %v2061_v44 }
 0x73d   : > { %v2066_v41 = vsub.f32 1.5, %v2065_v37 }
 0x73f   : > { %v2067_v58 = vmul.f32 %v2898_v20, %v2066_v41 }
 0x741   : > { %v2900_v42 = vpop.eup %2899  ;;  %v2071_v45 = vsel %vm2070_vm15, %v2898_v20, %v2067_v58 }
 0x742   : > { %v2073_v0 = vmul.f32 %v2900_v42, %v2061_v44  ;;  %v2082_v8 = vmul.f32 %v2071_v45, %v4098_v60  ;;  %vm2079_vm1 = vweird.f32 %v2900_v42  ;;  %v2202_v60 = vld [vmem:[#allocation14 + $0xa0] sm:$0xff] }
 0x743   : > { %vm2080_vm3 = vmor %vm2078_vm2, %vm2079_vm1  ;;  %2252 = vmatpush.msra.mxu1 %v2202_v60 }
 0x744   : > { %v2074_v6 = vmul.f32 %v2900_v42, %v2073_v0  ;;  %v2087_v11 = vmul.f32 %v2826_v27, %v2082_v8 }
 0x745   : > { %2253 = vmatpush.msra.mxu1 %v2201_v55 }
 0x746   : > { %v2075_v47 = vmul.f32 0.5, %v2074_v6  ;;  %v2092_v22 = vadd.f32 %v2827_v10, %v2087_v11 }
 0x747   : > { %2254 = vmatpush.msra.mxu1 %v2200_v25 }
 0x748   : > { %v2076_v21 = vsub.f32 1.5, %v2075_v47  ;;  %2148 = vmatmul.f32.vlgmr.msrb.gmra.mxu2 %v2092_v22  ;;  %2171 = vmatmul.f32.vlgmr.msra.gmra.mxu3 %v2092_v22 }
 0x749   : > { %2255 = vmatpush.msra.mxu1 %v2199_v30 }
 0x74a   : > { %v2077_v23 = vmul.f32 %v2900_v42, %v2076_v21 }
 0x74b   : > { %2256 = vmatpush.msra.mxu1 %v2198_v52 }
 0x74c   : > { %v2081_v9 = vsel %vm2080_vm3, %v2900_v42, %v2077_v23 }
 0x74d   : > { %v2083_v17 = vmul.f32 %v2081_v9, %v4103_v3  ;;  %v2126_v3 = vld [vmem:[%s4208_s13] sm:$0x3] }
 0x74e   : > { %v2128_v26 = vperm.slane %v2126_v3, 0  ;;  %v2129_v56 = vperm.slane %v2126_v3, 1 }
 0x74f   : > { %v2088_v12 = vmul.f32 %v2826_v27, %v2083_v17 }
 0x751   : > { %v2093_v53 = vadd.f32 %v2827_v10, %v2088_v12 }
 0x753   : > { %2151 = vmatmul.f32.gmra.mxu2 %v2093_v53  ;;  %2174 = vmatmul.f32.gmra.mxu3 %v2093_v53 }
 0x7cb   : > { %v2149_v32 = vpop.f32.mrf.mxu2  ;;  %v2172_v14 = vpop.f32.mrf.mxu3 }
 0x7cc   : > { %v2150_v34 = vadd.f32 %v2149_v32, %v2128_v26  ;;  %v2173_v51 = vadd.f32 %v2172_v14, %v2129_v56 }
 0x7ce   : > { %v2178_v31 = vmax.f32 %v2150_v34, 0.0  ;;  %v2179_v35 = vmax.f32 %v2173_v51, 0.0 }
 0x7d0   : > { %2234 = vmatmul.f32.vlgmr.msrb.gmra.mxu0 %v2178_v31  ;;  %2257 = vmatmul.f32.vlgmr.msra.gmra.mxu1 %v2179_v35 }
 0x7d6   : > { %v2152_v2 = vpop.f32.mrf.mxu2  ;;  %v2175_v18 = vpop.f32.mrf.mxu3 }
 0x7d7   : > { %v2153_v33 = vadd.f32 %v2152_v2, %v2128_v26  ;;  %v2176_v39 = vadd.f32 %v2175_v18, %v2129_v56 }
 0x7d9   : > { %v2180_v40 = vmax.f32 %v2153_v33, 0.0  ;;  %v2181_v36 = vmax.f32 %v2176_v39, 0.0 }
 0x7db   : > { %2237 = vmatmul.f32.gmra.mxu0 %v2180_v40  ;;  %2260 = vmatmul.f32.gmra.mxu1 %v2181_v36 }
 0x84d   : > { %v2235_v20 = vpop.f32.mrf.mxu0  ;;  %v2258_v44 = vpop.f32.mrf.mxu1 }
 0x84e   : > { %v2236_v43 = vadd.f32 %v2828_v16, %v2235_v20 }
 0x850   : > { %v2259_v46 = vadd.f32 %v2258_v44, %v2236_v43 }
 0x852   : > { %v2264_v48 = vadd.f32 %v2259_v46, %v2092_v22 }
 0x854   : > { %2268 = vadd.xlane.f32.xlu0 %v2264_v48 }
 0x858   : > { %v2238_v63 = vpop.f32.mrf.mxu0  ;;  %v2261_v59 = vpop.f32.mrf.mxu1 }
 0x859   : > { %v2239_v19 = vadd.f32 %v2828_v16, %v2238_v63 }
 0x85b   : > { %v2262_v37 = vadd.f32 %v2261_v59, %v2239_v19 }
 0x85d   : > { %v2265_v49 = vadd.f32 %v2262_v37, %v2093_v53 }
 0x85f   : > { %2270 = vadd.xlane.f32.xlu2 %v2265_v49 }
 0x8c7   : > { %v2269_v50 = vpop.xlane.xlu0 %2268 }
 0x8c8   : > { %v2272_v41 = vmul.f32 %v2269_v50, %v4095_v57 }
 0x8ca   : > { %v2274_v4 = vsub.f32 %v2264_v48, %v2272_v41 }
 0x8cc   : > { %v2276_v54 = vmul.f32 %v2274_v4, %v2274_v4 }
 0x8ce   : > { %2278 = vadd.xlane.f32.xlu1 %v2276_v54 }
 0x8d2   : > { %v2271_v42 = vpop.xlane.xlu2 %2270 }
 0x8d3   : > { %v2273_v58 = vmul.f32 %v2271_v42, %v4095_v57 }
 0x8d5   : > { %v4125_v61 = vsub.f32 %v2265_v49, %v2273_v58 }
 0x8d7   : > { %v2277_v62 = vmul.f32 %v4125_v61, %v4125_v61 }
 0x8d9   : > { %2280 = vadd.xlane.f32.xlu0 %v2277_v62 }
 0x8da   : > { %3174 = shalt.err (!%p3171_p8)
}
 0x8db   : > { %s3286_s26 = smov 128   ;;  %s3287_s18 = smov 8  }
 0x8dc   : > { %2664 = dma.vmem_to_hbm [thread:$0]  (%p3502_p4), %s2356_s19, 2048, %s2358_s17, %s2326_s27, %s3286_s26, %s3286_s26, %s3287_s18  }
 0x8dd   : > { %s4278_s3 = sld [smem:[#allocation42_spill]]  ;;  %s2633_s27 = sshll.u32 %s3412_s24, 4 }
 0x8de   : > { %s4279_s17 = sld [smem:[#allocation43_spill]]  ;;  %s760_s8 = scalar_lea.vmem [#allocation16], %s2553_s0 }
 0x8df   : > { %s4280_s16 = sld [smem:[#allocation44_spill]]  ;;  %s2338_s25 = sshll.u32 %s760_s8, 4  ;;  %s2339_s25 = int_to_ptr.vmem [resolvable:$true] %s2338_s25 }
 0x8e0   : > { %s2321_s24 = scalar_lea.sflag [#allocation4], %s3558_s14 }
 0x8e3   : > { %v2829_v22 = vld [vmem:[%s4278_s3] ss:$0 sm:$0xff] }
 0x8e4   : > { %v2830_v60 = vld [vmem:[%s4279_s17] ss:$0 sm:$0xff] }
 0x8e5   : > { %s2337_s22 = scalar_lea.hbm %s4280_s16, %s2633_s27  ;;  %s3195_s28 = scalar_lea.hbm %s4280_s16, 32 }
 0x8e6   : > { %s2340_s20 = sshll.u32 %s2337_s22, 4  ;;  %s2341_s20 = int_to_ptr.hbm [resolvable:$true] %s2340_s20 }
 0x8e7   : > { %s3189_s6 = sshra.s32 %s2341_s20, 4  ;;  %s3190_s6 = int_to_ptr.hbm [resolvable:$true] %s3189_s6 }
 0x8e8   : > { %s3191_s0 = scalar_lea.hbm %s3190_s6, 16  ;;  %p3196_p0 = scmp.lt.s32.totalorder %s3190_s6, %s4280_s16 }
 0x8e9   : > { %p3192_p10 = scmp.ne.s32.totalorder %s3190_s6, %s3191_s0  ;;  %p3197_p2 = scmp.lt.s32.totalorder %s3195_s28, %s3191_s0 }
 0x8eb   : > { %p3193_p13 = pnand %p3192_p10, %p3502_p4  ;;  %p3198_p1 = por %p3197_p2, %p3196_p0 }
 0x8ed   : > { %p3194_p11 = pneg %p3193_p13 }
 0x8ef   : > { %p3199_p3 = pnand %p3198_p1, %p3194_p11 }
 0x941   : > { %v2279_v0 = vpop.xlane.xlu1 %2278 }
 0x942   : > { %v2282_v27 = vmul.f32 %v2279_v0, %v4095_v57 }
 0x944   : > { %v2284_v45 = vadd.f32 1e-05, %v2282_v27 }
 0x946   : > { %2901 = vrsqrt.f32 %v2284_v45  ;;  %vm2292_vm5 = vweird.f32 %v2284_v45 }
 0x94c   : > { %v2281_v5 = vpop.xlane.xlu0 %2280  ;;  %v2902_v8 = vpop.eup %2901 }
 0x94d   : > { %v2283_v28 = vmul.f32 %v2281_v5, %v4095_v57  ;;  %v2287_v6 = vmul.f32 %v2902_v8, %v2284_v45  ;;  %vm2293_vm4 = vweird.f32 %v2902_v8 }
 0x94e   : > { %vm2294_vm6 = vmor %vm2292_vm5, %vm2293_vm4 }
 0x94f   : > { %v2285_v10 = vadd.f32 1e-05, %v2283_v28  ;;  %v2288_v13 = vmul.f32 %v2902_v8, %v2287_v6 }
 0x951   : > { %2903 = vrsqrt.f32 %v2285_v10  ;;  %v2289_v15 = vmul.f32 0.5, %v2288_v13  ;;  %vm2302_vm8 = vweird.f32 %v2285_v10 }
 0x953   : > { %v2290_v47 = vsub.f32 1.5, %v2289_v15 }
 0x955   : > { %v2291_v21 = vmul.f32 %v2902_v8, %v2290_v47 }
 0x957   : > { %v2904_v11 = vpop.eup %2903  ;;  %v2295_v57 = vsel %vm2294_vm6, %v2902_v8, %v2291_v21 }
 0x958   : > { %v2297_v7 = vmul.f32 %v2904_v11, %v2285_v10  ;;  %v2306_v23 = vmul.f32 %v2295_v57, %v2274_v4  ;;  %vm2303_vm7 = vweird.f32 %v2904_v11 }
 0x959   : > { %vm2304_vm9 = vmor %vm2302_vm8, %vm2303_vm7 }
 0x95a   : > { %v2298_v24 = vmul.f32 %v2904_v11, %v2297_v7  ;;  %v2311_v55 = vmul.f32 %v2829_v22, %v2306_v23 }
 0x95c   : > { %v2299_v9 = vmul.f32 0.5, %v2298_v24  ;;  %v2316_v17 = vadd.f32 %v2830_v60, %v2311_v55 }
 0x95e   : > { %v2300_v12 = vsub.f32 1.5, %v2299_v9  ;;  %2318 = vst [vmem:[%s760_s8] sm:$0xff] %v2316_v17 }
 0x960   : > { %v2301_v53 = vmul.f32 %v2904_v11, %v2300_v12 }
 0x962   : > { %v2305_v29 = vsel %vm2304_vm9, %v2904_v11, %v2301_v53 }
 0x963   : > { %v2307_v25 = vmul.f32 %v2305_v29, %v4125_v61 }
 0x965   : > { %v2312_v38 = vmul.f32 %v2829_v22, %v2307_v25 }
 0x967   : > { %v2317_v30 = vadd.f32 %v2830_v60, %v2312_v38 }
 0x969   : > { %2319 = vst [vmem:[%s760_s8 + $0x8] sm:$0xff] %v2317_v30 }
 0x96a   : > { %3202 = shalt.err (!%p3199_p3)
}
 0x96b   : > { %2663 = dma.vmem_to_hbm [thread:$0]  (%p3502_p4), %s2339_s25, 256, %s2341_s20, %s2321_s24, %s3286_s26, %s3286_s26, %s3287_s18  }
 0x96c PF: > { %s4281_s14 = sld [smem:[#allocation27_spill]]  ;;  %p4283_p12 = scmp.ge.s32.totalorder %s3265_s21, 2 }
 0x96e   : > { %p2694_p7 = pnand %p4283_p12, %p3506_p6 }
 0x970   : > { %p2695_p9 = pneg %p2694_p7 }
 0x972   : > { %s2372_s8 = sand.u32 1, %s4281_s14  }
 0x973   : > { %s2373_s29 = scalar_lea.sflag [#allocation4], %s2372_s8 }
 0x974   : > { %3244 = dma.done.wait (%p2695_p9), %s2373_s29, 256  }
 0x975   : > { %3246 = vsyncadd (%p2695_p9), %s2373_s29, 4294967040  ;;  %s2383_s23 = scalar_lea.sflag [#allocation18], %s2372_s8 }
 0x976   : > { %3248 = dma.done.wait (%p2695_p9), %s2383_s23, 2048  }
 0x977   : > { %3250 = vsyncadd (%p2695_p9), %s2383_s23, 4294965248  ;;  %s4284_s21 = sld [smem:[#allocation29_spill]]  ;;  %s4287_s0 = smov %s3257_s30 }
 0x978   : > { %s4285_s2 = sld [smem:[#allocation28_spill]] }
 0x979   : > { %s4286_s20 = sld [smem:[#allocation30_spill]] }
 0x97d   : > { %p42_p4 = scmp.ge.s32.totalorder %s4284_s21, 4  }
 0x97e   : > { %s4288_s30 = smov %s4285_s2 }
 0x97f   :  { %44 = sbr.rel (!%p42_p4) target bundleno = 26 (0x1a), region = 198 }
 0x984   :  { %2389 = vsyncpa [#allocation3], 1 }
 0x985   :  { %2391 = vsyncpa [#allocation3 + $0x1], 1 }
 0x986   :  { %2392 = vsyncpa [#allocation6], 1 }
 0x987   :  { %2394 = vsyncpa [#allocation6 + $0x1], 1 }
 0x988   :  { %2395 = vsyncpa [#allocation9], 1 }
 0x989   :  { %2396 = vsyncpa [#allocation12], 1 }
 0x98a   :  { %2397 = vsyncpa [#allocation15], 1 }
 0x98b   :  { %2398 = vsyncpa [#allocation4], 1 }
 0x98c   :  { %2400 = vsyncpa [#allocation4 + $0x1], 1 }
 0x98d   :  { %2401 = vsyncpa [#allocation18], 1 }
 0x98e   :  { %2403 = vsyncpa [#allocation18 + $0x1], 1 }

</bundles_post_ra>
